<compile_context>
chip_gen: v7x
topology: tpu7x:2x2x1
jax: 0.10.0
libtpu: 0.0.40
codegen_flags: <defaults>
</compile_context>

<pallas_src>
import math
import functools

import jax
import jax.numpy as jnp
import numpy as np
from jax.experimental import pallas as pl
from jax.experimental.pallas import tpu as pltpu

# ---------------- model configuration (small, consistent with the module) ----
NUM_FEATURES = 8
EMBED_DIM = 28
NUM_DIM = 4
D_MODEL = EMBED_DIM + NUM_DIM          # 32
NUM_HEADS = 4
HEAD_DIM = D_MODEL // NUM_HEADS        # 8
NUM_HIDDEN = 16                        # linear0 out = 2 * NUM_HIDDEN (ReGLU)
NUM_LAYERS = 2
MAX_VISITS = 8                         # T (sequence length / max_visits)
MAX_LEN = 16                           # positional-encoding table size
PARALLEL_POOLS = 4
BATCH = 2

R_ROWS = BATCH * MAX_VISITS            # 16 rows (B*T)
C_COLS = NUM_HEADS * R_ROWS            # 64 block-diagonal key/value columns

NEG_INF = -1e30                        # additive key-padding mask value
FAR = 1e9                              # sentinel "key belongs to another batch"

# ---- packed weight slab layout (32 lanes, every entry 8-row aligned) --------
WEMB_OFS = 0                                   # (NUM_FEATURES, 32)
PE_OFS = WEMB_OFS + NUM_FEATURES               # (MAX_LEN, 32)
HM_OFS = PE_OFS + MAX_LEN                      # head mask (C, 32)
POOL_OFS = HM_OFS + C_COLS                     # pooler matrix tiled (R, 32)
LAYER_OFS = POOL_OFS + R_ROWS                  # per-layer weights
LAYER_W_ROWS = 7 * D_MODEL                     # wq wk wv wo w0a w0b w1 (32 rows each)
WSLAB_ROWS = LAYER_OFS + NUM_LAYERS * LAYER_W_ROWS   # 552

# ---- packed bias slab layout (one 32-lane row per vector) -------------------
BIAS_PER_LAYER = 12     # n0w n0b bq bk bv bo n1w n1b b0a b0b b1 pad
C0_ROW = NUM_LAYERS * BIAS_PER_LAYER           # 24 (head constant, broadcast)
BSLAB_ROWS = 32


# ---------------- in-kernel helpers ------------------------------------------
def _layernorm(x, w, b, eps=1e-5):
    mu = jnp.mean(x, axis=-1, keepdims=True)
    xc = x - mu
    var = jnp.mean(xc * xc, axis=-1, keepdims=True)
    return xc * jax.lax.rsqrt(var + eps) * w + b


# ---------------- single fused kernel: whole forward pass --------------------
def fused_forward_kernel(src_ref, times_ref, num_ref, len_ref,
                         boh_ref, rep_ref, maskrc_ref, w_ref, b_ref,
                         o_ref,
                         *, num_heads, head_dim, num_layers, seq_len):
    f32 = jnp.float32
    R = src_ref.shape[0]                  # B*T rows
    T = seq_len
    B = R // T
    D = num_heads * head_dim
    C = num_heads * R                     # block-diagonal key/value columns
    dot = functools.partial(jnp.dot, preferred_element_type=f32)

    # ---- host-precomputed constants (no in-kernel iota construction) ----
    batch_oh = boh_ref[...]                               # (R, B) one-hot of batch
    rep = rep_ref[...]                                    # (C, R) replication selector
    head_mask = w_ref[HM_OFS:HM_OFS + C, :]               # (C, D) head placement
    colpos = maskrc_ref[0:R, :]                           # (R, C) key pos / FAR sentinel
    seg_sel = maskrc_ref[R:R + C, :]                      # (C, C) softmax segment selector

    # per-row lengths / numerical features via tiny one-hot matmuls (MXU)
    len_row = dot(batch_oh, len_ref[...])                 # (R, 1)
    num_row = dot(batch_oh, num_ref[...])                 # (R, D)

    # key-padding + cross-batch masking in ONE compare (FAR >= len always true)
    attn_bias = jnp.where(colpos >= len_row, NEG_INF, 0.0)        # (R, C)

    # ---- embedding: Linear(no bias)*sqrt(E) + positional enc + numerical ----
    x = dot(src_ref[...], w_ref[WEMB_OFS:WEMB_OFS + NUM_FEATURES, :])
    t_oh = (jax.lax.broadcasted_iota(jnp.int32, (R, MAX_LEN), 1)
            == times_ref[...]).astype(f32)                # data-dependent one-hot
    x = x + dot(t_oh, w_ref[PE_OFS:PE_OFS + MAX_LEN, :])
    x = x + num_row

    inv_sqrt_dh = 1.0 / math.sqrt(head_dim)
    for li in range(num_layers):
        wb = LAYER_OFS + li * LAYER_W_ROWS
        bb = li * BIAS_PER_LAYER

        # ---- attention: all batches & heads block-diagonally, MXU only ----
        if li != 0:  # prenormalization=True -> layer 0 has no norm0
            xr = _layernorm(x, b_ref[bb:bb + 1, :], b_ref[bb + 1:bb + 2, :])
        else:
            xr = x
        q = dot(xr, w_ref[wb:wb + D, :]) + b_ref[bb + 2:bb + 3, :]
        k = dot(xr, w_ref[wb + D:wb + 2 * D, :]) + b_ref[bb + 3:bb + 4, :]
        v = dot(xr, w_ref[wb + 2 * D:wb + 3 * D, :]) + b_ref[bb + 4:bb + 5, :]
        k_bd = dot(rep, k) * head_mask                    # (C, D) block-diagonal K
        v_bd = dot(rep, v) * head_mask                    # (C, D) block-diagonal V
        s = jax.lax.dot_general(q, k_bd, (((1,), (1,)), ((), ())),
                                preferred_element_type=f32) * inv_sqrt_dh
        s = s + attn_bias                                 # (R, C)
        m = jnp.max(s, axis=-1, keepdims=True)            # row shift (exact normalization)
        p = jnp.exp(s - m)
        denom = dot(p, seg_sel)                           # per-(head,batch)-segment sums
        p = p * pl.reciprocal(jnp.maximum(denom, 1e-20), approx=True)
        attn = dot(p, v_bd)                               # (R, D) concatenated heads
        attn = dot(attn, w_ref[wb + 3 * D:wb + 4 * D, :]) + b_ref[bb + 5:bb + 6, :]
        # TODO(synk): attention/residual/ffn dropout omitted (inference semantics).
        x = x + attn

        # ---- feed-forward (ReGLU); w0 split into two zero-padded D-wide
        # halves so no sub-tile lane slicing is needed anywhere ----
        xr = _layernorm(x, b_ref[bb + 6:bb + 7, :], b_ref[bb + 7:bb + 8, :])
        h_lin = dot(xr, w_ref[wb + 4 * D:wb + 5 * D, :]) + b_ref[bb + 8:bb + 9, :]
        h_gate = dot(xr, w_ref[wb + 5 * D:wb + 6 * D, :]) + b_ref[bb + 9:bb + 10, :]
        hact = h_lin * jnp.maximum(h_gate, 0.0)           # padded cols stay exactly 0
        x = x + dot(hact, w_ref[wb + 6 * D:wb + 7 * D, :]) + b_ref[bb + 10:bb + 11, :]

    # ---- pooler + prediction head, folded to one (R, D) matrix + scalar ----
    poolm = w_ref[POOL_OFS:POOL_OFS + R, :]                       # host-tiled (R, D)
    rowsum = jnp.sum(x * poolm, axis=-1, keepdims=True)           # (R, 1)
    out = dot(jnp.ones((1, R), f32), rowsum * batch_oh)           # (1, B) on the MXU
    c0v = b_ref[C0_ROW:C0_ROW + 1, :]                             # c0 broadcast row
    o_ref[...] = out + c0v[:, 0:B]


def fused_forward_pallas(src2, times2, num_pad, len2, kp):
    B = num_pad.shape[0]

    def full(shape):
        nd = len(shape)
        return pl.BlockSpec(tuple(shape), lambda i, _nd=nd: (0,) * _nd)

    kern = functools.partial(
        fused_forward_kernel, num_heads=NUM_HEADS, head_dim=HEAD_DIM,
        num_layers=NUM_LAYERS, seq_len=MAX_VISITS)

    args = (src2, times2, num_pad, len2,
            kp['batch_oh'], kp['rep'], kp['maskrc'], kp['wslab'], kp['bslab'])
    in_specs = [full(a.shape) for a in args]

    # TODO(synk): for larger serving batches on v7x, add a leading "parallel"
    # grid axis over per-batch row blocks to use the second TensorCore.
    return pl.pallas_call(
        kern,
        out_shape=jax.ShapeDtypeStruct((1, B), jnp.float32),
        grid_spec=pltpu.PrefetchScalarGridSpec(
            num_scalar_prefetch=0,
            grid=(1,),
            in_specs=in_specs,
            out_specs=full((1, B)),
        ),
        compiler_params=pltpu.CompilerParams(
            dimension_semantics=("arbitrary",)),
    )(*args)


# ---------------- parameters --------------------------------------------------
def make_pe(max_len, dim):
    position = np.arange(max_len, dtype=np.float32)[:, None]
    div_term = np.exp(np.arange(0, dim, 2, dtype=np.float32)
                      * (-math.log(10000.0) / dim))
    pe = np.zeros((max_len, dim), np.float32)
    pe[:, 0::2] = np.sin(position * div_term)
    pe[:, 1::2] = np.cos(position * div_term)
    return jnp.asarray(pe)


def init_params(key):
    D = D_MODEL
    keys = iter(jax.random.split(key, 64))
    p = {}
    p['w_emb'] = jax.random.uniform(next(keys), (EMBED_DIM, NUM_FEATURES),
                                    jnp.float32, -0.1, 0.1)
    p['pe'] = make_pe(MAX_LEN, EMBED_DIM)
    layers = []
    for li in range(NUM_LAYERS):
        lp = {
            'in_proj_w': 0.2 * jax.random.normal(next(keys), (3 * D, D)) / math.sqrt(D),
            'in_proj_b': 0.1 * jax.random.normal(next(keys), (3 * D,)),
            'out_proj_w': 0.2 * jax.random.normal(next(keys), (D, D)) / math.sqrt(D),
            'out_proj_b': 0.1 * jax.random.normal(next(keys), (D,)),
            'w0': 0.2 * jax.random.normal(next(keys), (2 * NUM_HIDDEN, D)) / math.sqrt(D),
            'b0': 0.1 * jax.random.normal(next(keys), (2 * NUM_HIDDEN,)),
            'w1': 0.2 * jax.random.normal(next(keys), (D, NUM_HIDDEN)) / math.sqrt(NUM_HIDDEN),
            'b1': 0.1 * jax.random.normal(next(keys), (D,)),
            'n1w': 1.0 + 0.05 * jax.random.normal(next(keys), (D,)),
            'n1b': 0.05 * jax.random.normal(next(keys), (D,)),
        }
        if li != 0:  # prenormalization=True -> layer 0 has no norm0
            lp['n0w'] = 1.0 + 0.05 * jax.random.normal(next(keys), (D,))
            lp['n0b'] = 0.05 * jax.random.normal(next(keys), (D,))
        layers.append(lp)
    p['layers_raw'] = layers
    p['pooler_w'] = 0.2 * jax.random.normal(next(keys), (PARALLEL_POOLS, MAX_VISITS)) / math.sqrt(MAX_VISITS)
    p['pooler_b'] = 0.1 * jax.random.normal(next(keys), (PARALLEL_POOLS,))
    p['head_w'] = 0.2 * jax.random.normal(next(keys), (1, PARALLEL_POOLS * D)) / math.sqrt(PARALLEL_POOLS * D)
    p['head_b'] = 0.1 * jax.random.normal(next(keys), (1,))
    return p


def to_kernel_params(p):
    """Pack all parameters + shape-constant masks into a few aligned slabs."""
    D = D_MODEL
    f32 = jnp.float32
    scale = math.sqrt(EMBED_DIM)

    def pad_cols(a, width=D):
        pad = width - a.shape[1]
        return a if pad == 0 else jnp.concatenate(
            [a, jnp.zeros((a.shape[0], pad), f32)], axis=1)

    # ---- weight slab (WSLAB_ROWS, D) ----------------------------------------
    rows = []
    rows.append(pad_cols(p['w_emb'].T * scale))                    # (8, 32) sqrt(E) folded
    rows.append(pad_cols(p['pe']))                                 # (16, 32)
    hm = (np.arange(C_COLS)[:, None] // R_ROWS ==
          np.arange(D)[None, :] // HEAD_DIM).astype(np.float32)    # head placement
    rows.append(jnp.asarray(hm))                                   # (64, 32)
    hw_dp = p['head_w'].reshape(D, PARALLEL_POOLS)                 # (D, P)
    poolM = p['pooler_w'].T @ hw_dp.T                              # (T, D) pooler+head folded
    rows.append(jnp.tile(poolM, (BATCH, 1)))                       # (R, D) pre-tiled
    for lp in p['layers_raw']:
        wq, wk, wv = jnp.split(lp['in_proj_w'], 3, axis=0)         # (D, D) each
        rows += [wq.T, wk.T, wv.T, lp['out_proj_w'].T]
        w0 = lp['w0']                                              # (2H, D)
        rows.append(pad_cols(w0[:NUM_HIDDEN].T))                   # ReGLU linear half
        rows.append(pad_cols(w0[NUM_HIDDEN:].T))                   # ReGLU gate half
        rows.append(jnp.concatenate(
            [lp['w1'].T, jnp.zeros((D - NUM_HIDDEN, D), f32)], axis=0))
    wslab = jnp.concatenate(rows, axis=0).astype(f32)
    assert wslab.shape == (WSLAB_ROWS, D)

    # ---- bias slab (BSLAB_ROWS, D): one row per vector -----------------------
    brows = []
    for li, lp in enumerate(p['layers_raw']):
        if li != 0:
            brows += [lp['n0w'], lp['n0b']]
        else:  # placeholder, never used (layer 0 has no norm0)
            brows += [jnp.ones((D,), f32), jnp.zeros((D,), f32)]
        bq, bk, bv = jnp.split(lp['in_proj_b'], 3)
        brows += [bq, bk, bv, lp['out_proj_b'], lp['n1w'], lp['n1b'],
                  jnp.pad(lp['b0'][:NUM_HIDDEN], (0, D - NUM_HIDDEN)),
                  jnp.pad(lp['b0'][NUM_HIDDEN:], (0, D - NUM_HIDDEN)),
                  lp['b1'], jnp.zeros((D,), f32)]
    c0 = jnp.sum(p['pooler_b'] * jnp.sum(hw_dp, axis=0)) + p['head_b'][0]
    brows.append(jnp.broadcast_to(c0, (D,)))
    while len(brows) < BSLAB_ROWS:
        brows.append(jnp.zeros((D,), f32))
    bslab = jnp.stack(brows).astype(f32)
    assert bslab.shape == (BSLAB_ROWS, D)

    # ---- host-precomputed constant masks -------------------------------------
    boh = (np.arange(R_ROWS)[:, None] // MAX_VISITS ==
           np.arange(BATCH)[None, :]).astype(np.float32)            # (R, B)
    rep = (np.arange(C_COLS)[:, None] % R_ROWS ==
           np.arange(R_ROWS)[None, :]).astype(np.float32)           # (C, R)
    col_t = (np.arange(C_COLS)[None, :] % MAX_VISITS).astype(np.float32)
    col_b = (np.arange(C_COLS)[None, :] % R_ROWS) // MAX_VISITS
    row_b = np.arange(R_ROWS)[:, None] // MAX_VISITS
    colpos = np.where(row_b == col_b,
                      np.broadcast_to(col_t, (R_ROWS, C_COLS)), FAR).astype(np.float32)
    seg = (np.arange(C_COLS)[:, None] // MAX_VISITS ==
           np.arange(C_COLS)[None, :] // MAX_VISITS).astype(np.float32)
    maskrc = jnp.asarray(np.concatenate([colpos, seg], axis=0))      # (R+C, C)

    return dict(wslab=wslab, bslab=bslab, batch_oh=jnp.asarray(boh),
                rep=jnp.asarray(rep), maskrc=maskrc)


# ---------------- full forward (single fused Pallas call) ---------------------
def transformer_forward(kp, source, numerical, lengths, times):
    B, T, F = source.shape
    src2 = source.reshape(B * T, F)
    times2 = times.reshape(B * T, 1).astype(jnp.int32)
    num_pad = jnp.concatenate(
        [jnp.zeros((B, EMBED_DIM), jnp.float32), numerical.astype(jnp.float32)], axis=1)
    len2 = lengths.astype(jnp.float32).reshape(B, 1)
    out = fused_forward_pallas(src2, times2, num_pad, len2, kp)      # (1, B)
    return out.reshape(B)


# ---------------- pure-JAX reference (mirrors the PyTorch forward) ------------
def _ln_ref(x, w, b, eps=1e-5):
    mu = jnp.mean(x, axis=-1, keepdims=True)
    var = jnp.mean((x - mu) ** 2, axis=-1, keepdims=True)
    return (x - mu) / jnp.sqrt(var + eps) * w + b


def reference_forward(p, source, numerical, lengths, times):
    B, T, _ = source.shape
    D = D_MODEL
    emb = source @ p['w_emb'].T * math.sqrt(EMBED_DIM) + p['pe'][times]
    x = jnp.concatenate(
        [emb, jnp.broadcast_to(numerical[:, None, :], (B, T, NUM_DIM))], axis=2)
    key_mask = jnp.arange(T)[None, :] >= lengths[:, None]
    bias = jnp.where(key_mask, NEG_INF, 0.0)[:, None, None, :]       # (B,1,1,T)
    for li, lp in enumerate(p['layers_raw']):
        xr = _ln_ref(x, lp['n0w'], lp['n0b']) if li != 0 else x
        qkv = xr @ lp['in_proj_w'].T + lp['in_proj_b']
        q, k, v = jnp.split(qkv, 3, axis=-1)
        sh = lambda t: t.reshape(B, T, NUM_HEADS, HEAD_DIM).transpose(0, 2, 1, 3)
        s = jnp.einsum('bhqd,bhkd->bhqk', sh(q), sh(k)) / math.sqrt(HEAD_DIM) + bias
        pa = jax.nn.softmax(s, axis=-1)
        o = jnp.einsum('bhqk,bhkd->bhqd', pa, sh(v)).transpose(0, 2, 1, 3).reshape(B, T, D)
        o = o @ lp['out_proj_w'].T + lp['out_proj_b']
        x = x + o
        xr = _ln_ref(x, lp['n1w'], lp['n1b'])
        h = xr @ lp['w0'].T + lp['b0']
        h = h[..., :NUM_HIDDEN] * jnp.maximum(h[..., NUM_HIDDEN:], 0.0)
        x = x + (h @ lp['w1'].T + lp['b1'])
    pooled = jnp.einsum('btd,pt->bdp', x, p['pooler_w']) + p['pooler_b']
    flat = pooled.reshape(B, D * PARALLEL_POOLS)
    out = flat @ p['head_w'].T + p['head_b']
    return out.squeeze()


# ---------------- main ---------------------------------------------------------
if __name__ == "__main__":
    key = jax.random.PRNGKey(0)
    pkey, dkey = jax.random.split(key)
    raw = init_params(pkey)
    kp = to_kernel_params(raw)

    k1, k2, k3 = jax.random.split(dkey, 3)
    lengths = jnp.array([5, 8], dtype=jnp.int32)                 # visits per patient
    source = jax.random.normal(k1, (BATCH, MAX_VISITS, NUM_FEATURES), jnp.float32)
    times = jax.random.randint(k2, (BATCH, MAX_VISITS), 0, MAX_LEN)
    numerical = jax.random.normal(k3, (BATCH, NUM_DIM), jnp.float32)
    # emulate pad_sequence: zero out positions beyond each length
    valid = jnp.arange(MAX_VISITS)[None, :] < lengths[:, None]
    source = source * valid[:, :, None]
    times = jnp.where(valid, times, 0)

    fwd = jax.jit(transformer_forward)
    out = fwd(kp, source, numerical, lengths, times)
    out = jax.block_until_ready(out)

    ref = reference_forward(raw, source, numerical, lengths, times)
    np.testing.assert_allclose(np.asarray(out), np.asarray(ref),
                               rtol=3e-2, atol=3e-2)
    print("KERNEL_OK")
</pallas_src>

<mosaic_0001>
module attributes {stable_mosaic.version = 11 : i64} {
  func.func @fused_forward_kernel(%arg0: i32, %arg1: memref<16x8xf32, #tpu.memory_space<vmem>>, %arg2: memref<16x1xi32, #tpu.memory_space<vmem>>, %arg3: memref<2x32xf32, #tpu.memory_space<vmem>>, %arg4: memref<2x1xf32, #tpu.memory_space<vmem>>, %arg5: memref<16x2xf32, #tpu.memory_space<vmem>>, %arg6: memref<64x16xf32, #tpu.memory_space<vmem>>, %arg7: memref<80x64xf32, #tpu.memory_space<vmem>>, %arg8: memref<552x32xf32, #tpu.memory_space<vmem>>, %arg9: memref<32x32xf32, #tpu.memory_space<vmem>>, %arg10: memref<1x2xf32, #tpu.memory_space<vmem>>) attributes {dimension_semantics = [#tpu.dimension_semantics<arbitrary>], iteration_bounds = array<i64: 1>, scalar_prefetch = 0 : i64, scratch_operands = 0 : i64, tpu.core_type = #tpu.core_type<tc>, window_params = [{pipeline_mode = #tpu.pipeline_mode<synchronous>, transform_indices = @transform_0, window_bounds = array<i64: 16, 8>}, {pipeline_mode = #tpu.pipeline_mode<synchronous>, transform_indices = @transform_1, window_bounds = array<i64: 16, 1>}, {pipeline_mode = #tpu.pipeline_mode<synchronous>, transform_indices = @transform_2, window_bounds = array<i64: 2, 32>}, {pipeline_mode = #tpu.pipeline_mode<synchronous>, transform_indices = @transform_3, window_bounds = array<i64: 2, 1>}, {pipeline_mode = #tpu.pipeline_mode<synchronous>, transform_indices = @transform_4, window_bounds = array<i64: 16, 2>}, {pipeline_mode = #tpu.pipeline_mode<synchronous>, transform_indices = @transform_5, window_bounds = array<i64: 64, 16>}, {pipeline_mode = #tpu.pipeline_mode<synchronous>, transform_indices = @transform_6, window_bounds = array<i64: 80, 64>}, {pipeline_mode = #tpu.pipeline_mode<synchronous>, transform_indices = @transform_7, window_bounds = array<i64: 552, 32>}, {pipeline_mode = #tpu.pipeline_mode<synchronous>, transform_indices = @transform_8, window_bounds = array<i64: 32, 32>}, {pipeline_mode = #tpu.pipeline_mode<synchronous>, transform_indices = @transform_9, window_bounds = array<i64: 1, 2>}]} {
    %c0 = arith.constant 0 : index
    %c0_0 = arith.constant 0 : index
    %0 = vector.load %arg5[%c0, %c0_0] : memref<16x2xf32, #tpu.memory_space<vmem>>, vector<16x2xf32>
    %c0_1 = arith.constant 0 : index
    %c0_2 = arith.constant 0 : index
    %1 = vector.load %arg6[%c0_1, %c0_2] : memref<64x16xf32, #tpu.memory_space<vmem>>, vector<64x16xf32>
    %c24 = arith.constant 24 : index
    %c0_3 = arith.constant 0 : index
    %2 = vector.load %arg8[%c24, %c0_3] : memref<552x32xf32, #tpu.memory_space<vmem>>, vector<64x32xf32>
    %c0_4 = arith.constant 0 : index
    %c0_5 = arith.constant 0 : index
    %3 = vector.load %arg7[%c0_4, %c0_5] : memref<80x64xf32, #tpu.memory_space<vmem>>, vector<16x64xf32>
    %c16 = arith.constant 16 : index
    %c0_6 = arith.constant 0 : index
    %4 = vector.load %arg7[%c16, %c0_6] : memref<80x64xf32, #tpu.memory_space<vmem>>, vector<64x64xf32>
    %c0_7 = arith.constant 0 : index
    %c0_8 = arith.constant 0 : index
    %5 = vector.load %arg4[%c0_7, %c0_8] : memref<2x1xf32, #tpu.memory_space<vmem>>, vector<2x1xf32>
    %cst = arith.constant dense<0.000000e+00> : vector<16x1xf32>
    %6 = tpu.matmul %0, %5, %cst {dimension_numbers = #tpu.dot_dimension_numbers<[1], [0], [0], [1], [0, 0, 1, 1], [], []>} : vector<16x2xf32>, vector<2x1xf32>, vector<16x1xf32> -> vector<16x1xf32>
    %c0_9 = arith.constant 0 : index
    %c0_10 = arith.constant 0 : index
    %7 = vector.load %arg3[%c0_9, %c0_10] : memref<2x32xf32, #tpu.memory_space<vmem>>, vector<2x32xf32>
    %cst_11 = arith.constant dense<0.000000e+00> : vector<16x32xf32>
    %8 = tpu.matmul %0, %7, %cst_11 {dimension_numbers = #tpu.dot_dimension_numbers<[1], [0], [0], [1], [0, 0, 1, 1], [], []>} : vector<16x2xf32>, vector<2x32xf32>, vector<16x32xf32> -> vector<16x32xf32>
    %9 = vector.broadcast %6 : vector<16x1xf32> to vector<16x64xf32>
    %10 = arith.cmpf oge, %3, %9 : vector<16x64xf32>
    %cst_12 = arith.constant -1.000000e+30 : f32
    %cst_13 = arith.constant 0.000000e+00 : f32
    %11 = vector.broadcast %cst_12 : f32 to vector<16x64xf32>
    %12 = vector.broadcast %cst_13 : f32 to vector<16x64xf32>
    %13 = arith.select %10, %11, %12 : vector<16x64xi1>, vector<16x64xf32>
    %c0_14 = arith.constant 0 : index
    %c0_15 = arith.constant 0 : index
    %14 = vector.load %arg1[%c0_14, %c0_15] : memref<16x8xf32, #tpu.memory_space<vmem>>, vector<16x8xf32>
    %c0_16 = arith.constant 0 : index
    %c0_17 = arith.constant 0 : index
    %15 = vector.load %arg8[%c0_16, %c0_17] : memref<552x32xf32, #tpu.memory_space<vmem>>, vector<8x32xf32>
    %cst_18 = arith.constant dense<0.000000e+00> : vector<16x32xf32>
    %16 = tpu.matmul %14, %15, %cst_18 {dimension_numbers = #tpu.dot_dimension_numbers<[1], [0], [0], [1], [0, 0, 1, 1], [], []>} : vector<16x8xf32>, vector<8x32xf32>, vector<16x32xf32> -> vector<16x32xf32>
    %17 = tpu.iota {dimensions = array<i32: 1>} : vector<16x16xi32>
    %c0_19 = arith.constant 0 : index
    %c0_20 = arith.constant 0 : index
    %18 = vector.load %arg2[%c0_19, %c0_20] : memref<16x1xi32, #tpu.memory_space<vmem>>, vector<16x1xi32>
    %19 = vector.broadcast %18 : vector<16x1xi32> to vector<16x16xi32>
    %20 = arith.cmpi eq, %17, %19 : vector<16x16xi32>
    %21 = arith.extui %20 : vector<16x16xi1> to vector<16x16xi32>
    %22 = arith.sitofp %21 : vector<16x16xi32> to vector<16x16xf32>
    %c8 = arith.constant 8 : index
    %c0_21 = arith.constant 0 : index
    %23 = vector.load %arg8[%c8, %c0_21] : memref<552x32xf32, #tpu.memory_space<vmem>>, vector<16x32xf32>
    %cst_22 = arith.constant dense<0.000000e+00> : vector<16x32xf32>
    %24 = tpu.matmul %22, %23, %cst_22 {dimension_numbers = #tpu.dot_dimension_numbers<[1], [0], [0], [1], [0, 0, 1, 1], [], []>} : vector<16x16xf32>, vector<16x32xf32>, vector<16x32xf32> -> vector<16x32xf32>
    %25 = arith.addf %16, %24 : vector<16x32xf32>
    %26 = arith.addf %25, %8 : vector<16x32xf32>
    %c104 = arith.constant 104 : index
    %c0_23 = arith.constant 0 : index
    %27 = vector.load %arg8[%c104, %c0_23] : memref<552x32xf32, #tpu.memory_space<vmem>>, vector<32x32xf32>
    %cst_24 = arith.constant dense<0.000000e+00> : vector<16x32xf32>
    %28 = tpu.matmul %26, %27, %cst_24 {dimension_numbers = #tpu.dot_dimension_numbers<[1], [0], [0], [1], [0, 0, 1, 1], [], []>} : vector<16x32xf32>, vector<32x32xf32>, vector<16x32xf32> -> vector<16x32xf32>
    %c2 = arith.constant 2 : index
    %c0_25 = arith.constant 0 : index
    %29 = vector.load %arg9[%c2, %c0_25] : memref<32x32xf32, #tpu.memory_space<vmem>>, vector<1x32xf32>
    %30 = vector.broadcast %29 : vector<1x32xf32> to vector<16x32xf32>
    %31 = arith.addf %28, %30 : vector<16x32xf32>
    %c136 = arith.constant 136 : index
    %c0_26 = arith.constant 0 : index
    %32 = vector.load %arg8[%c136, %c0_26] : memref<552x32xf32, #tpu.memory_space<vmem>>, vector<32x32xf32>
    %cst_27 = arith.constant dense<0.000000e+00> : vector<16x32xf32>
    %33 = tpu.matmul %26, %32, %cst_27 {dimension_numbers = #tpu.dot_dimension_numbers<[1], [0], [0], [1], [0, 0, 1, 1], [], []>} : vector<16x32xf32>, vector<32x32xf32>, vector<16x32xf32> -> vector<16x32xf32>
    %c3 = arith.constant 3 : index
    %c0_28 = arith.constant 0 : index
    %34 = vector.load %arg9[%c3, %c0_28] : memref<32x32xf32, #tpu.memory_space<vmem>>, vector<1x32xf32>
    %35 = vector.broadcast %34 : vector<1x32xf32> to vector<16x32xf32>
    %36 = arith.addf %33, %35 : vector<16x32xf32>
    %c168 = arith.constant 168 : index
    %c0_29 = arith.constant 0 : index
    %37 = vector.load %arg8[%c168, %c0_29] : memref<552x32xf32, #tpu.memory_space<vmem>>, vector<32x32xf32>
    %cst_30 = arith.constant dense<0.000000e+00> : vector<16x32xf32>
    %38 = tpu.matmul %26, %37, %cst_30 {dimension_numbers = #tpu.dot_dimension_numbers<[1], [0], [0], [1], [0, 0, 1, 1], [], []>} : vector<16x32xf32>, vector<32x32xf32>, vector<16x32xf32> -> vector<16x32xf32>
    %c4 = arith.constant 4 : index
    %c0_31 = arith.constant 0 : index
    %39 = vector.load %arg9[%c4, %c0_31] : memref<32x32xf32, #tpu.memory_space<vmem>>, vector<1x32xf32>
    %40 = vector.broadcast %39 : vector<1x32xf32> to vector<16x32xf32>
    %41 = arith.addf %38, %40 : vector<16x32xf32>
    %cst_32 = arith.constant dense<0.000000e+00> : vector<64x32xf32>
    %42 = tpu.matmul %1, %36, %cst_32 {dimension_numbers = #tpu.dot_dimension_numbers<[1], [0], [0], [1], [0, 0, 1, 1], [], []>} : vector<64x16xf32>, vector<16x32xf32>, vector<64x32xf32> -> vector<64x32xf32>
    %43 = arith.mulf %42, %2 : vector<64x32xf32>
    %cst_33 = arith.constant dense<0.000000e+00> : vector<64x32xf32>
    %44 = tpu.matmul %1, %41, %cst_33 {dimension_numbers = #tpu.dot_dimension_numbers<[1], [0], [0], [1], [0, 0, 1, 1], [], []>} : vector<64x16xf32>, vector<16x32xf32>, vector<64x32xf32> -> vector<64x32xf32>
    %45 = arith.mulf %44, %2 : vector<64x32xf32>
    %cst_34 = arith.constant dense<0.000000e+00> : vector<16x64xf32>
    %46 = tpu.matmul %31, %43, %cst_34 {dimension_numbers = #tpu.dot_dimension_numbers<[1], [1], [0], [0], [0, 0, 1, 0], [], []>} : vector<16x32xf32>, vector<64x32xf32>, vector<16x64xf32> -> vector<16x64xf32>
    %cst_35 = arith.constant 0.353553385 : f32
    %47 = vector.broadcast %cst_35 : f32 to vector<16x64xf32>
    %48 = arith.mulf %46, %47 : vector<16x64xf32>
    %49 = arith.addf %48, %13 : vector<16x64xf32>
    %cst_36 = arith.constant dense<0xFF800000> : vector<16xf32>
    %50 = vector.multi_reduction <maximumf>, %49, %cst_36 [1] : vector<16x64xf32> to vector<16xf32>
    %51 = vector.shape_cast %50 : vector<16xf32> to vector<16x1xf32>
    %52 = vector.broadcast %51 : vector<16x1xf32> to vector<16x64xf32>
    %53 = arith.subf %49, %52 : vector<16x64xf32>
    %54 = math.exp %53 : vector<16x64xf32>
    %cst_37 = arith.constant dense<0.000000e+00> : vector<16x64xf32>
    %55 = tpu.matmul %54, %4, %cst_37 {dimension_numbers = #tpu.dot_dimension_numbers<[1], [0], [0], [1], [0, 0, 1, 1], [], []>} : vector<16x64xf32>, vector<64x64xf32>, vector<16x64xf32> -> vector<16x64xf32>
    %cst_38 = arith.constant 9.99999968E-21 : f32
    %56 = vector.broadcast %cst_38 : f32 to vector<16x64xf32>
    %57 = arith.maximumf %55, %56 : vector<16x64xf32>
    %58 = tpu.reciprocal %57 {approx = true} : vector<16x64xf32> -> vector<16x64xf32>
    %59 = arith.mulf %54, %58 : vector<16x64xf32>
    %cst_39 = arith.constant dense<0.000000e+00> : vector<16x32xf32>
    %60 = tpu.matmul %59, %45, %cst_39 {dimension_numbers = #tpu.dot_dimension_numbers<[1], [0], [0], [1], [0, 0, 1, 1], [], []>} : vector<16x64xf32>, vector<64x32xf32>, vector<16x32xf32> -> vector<16x32xf32>
    %c200 = arith.constant 200 : index
    %c0_40 = arith.constant 0 : index
    %61 = vector.load %arg8[%c200, %c0_40] : memref<552x32xf32, #tpu.memory_space<vmem>>, vector<32x32xf32>
    %cst_41 = arith.constant dense<0.000000e+00> : vector<16x32xf32>
    %62 = tpu.matmul %60, %61, %cst_41 {dimension_numbers = #tpu.dot_dimension_numbers<[1], [0], [0], [1], [0, 0, 1, 1], [], []>} : vector<16x32xf32>, vector<32x32xf32>, vector<16x32xf32> -> vector<16x32xf32>
    %c5 = arith.constant 5 : index
    %c0_42 = arith.constant 0 : index
    %63 = vector.load %arg9[%c5, %c0_42] : memref<32x32xf32, #tpu.memory_space<vmem>>, vector<1x32xf32>
    %64 = vector.broadcast %63 : vector<1x32xf32> to vector<16x32xf32>
    %65 = arith.addf %62, %64 : vector<16x32xf32>
    %66 = arith.addf %26, %65 : vector<16x32xf32>
    %c6 = arith.constant 6 : index
    %c0_43 = arith.constant 0 : index
    %67 = vector.load %arg9[%c6, %c0_43] : memref<32x32xf32, #tpu.memory_space<vmem>>, vector<1x32xf32>
    %c7 = arith.constant 7 : index
    %c0_44 = arith.constant 0 : index
    %68 = vector.load %arg9[%c7, %c0_44] : memref<32x32xf32, #tpu.memory_space<vmem>>, vector<1x32xf32>
    %cst_45 = arith.constant dense<0.000000e+00> : vector<16xf32>
    %69 = vector.multi_reduction <add>, %66, %cst_45 [1] : vector<16x32xf32> to vector<16xf32>
    %70 = vector.shape_cast %69 : vector<16xf32> to vector<16x1xf32>
    %cst_46 = arith.constant 3.200000e+01 : f32
    %71 = vector.broadcast %cst_46 : f32 to vector<16x1xf32>
    %72 = arith.divf %70, %71 : vector<16x1xf32>
    %73 = vector.broadcast %72 : vector<16x1xf32> to vector<16x32xf32>
    %74 = arith.subf %66, %73 : vector<16x32xf32>
    %75 = arith.mulf %74, %74 : vector<16x32xf32>
    %cst_47 = arith.constant dense<0.000000e+00> : vector<16xf32>
    %76 = vector.multi_reduction <add>, %75, %cst_47 [1] : vector<16x32xf32> to vector<16xf32>
    %77 = vector.shape_cast %76 : vector<16xf32> to vector<16x1xf32>
    %cst_48 = arith.constant 3.200000e+01 : f32
    %78 = vector.broadcast %cst_48 : f32 to vector<16x1xf32>
    %79 = arith.divf %77, %78 : vector<16x1xf32>
    %cst_49 = arith.constant 9.99999974E-6 : f32
    %80 = vector.broadcast %cst_49 : f32 to vector<16x1xf32>
    %81 = arith.addf %79, %80 : vector<16x1xf32>
    %82 = math.rsqrt %81 : vector<16x1xf32>
    %83 = vector.broadcast %82 : vector<16x1xf32> to vector<16x32xf32>
    %84 = arith.mulf %74, %83 : vector<16x32xf32>
    %85 = vector.broadcast %67 : vector<1x32xf32> to vector<16x32xf32>
    %86 = arith.mulf %84, %85 : vector<16x32xf32>
    %87 = vector.broadcast %68 : vector<1x32xf32> to vector<16x32xf32>
    %88 = arith.addf %86, %87 : vector<16x32xf32>
    %c232 = arith.constant 232 : index
    %c0_50 = arith.constant 0 : index
    %89 = vector.load %arg8[%c232, %c0_50] : memref<552x32xf32, #tpu.memory_space<vmem>>, vector<32x32xf32>
    %cst_51 = arith.constant dense<0.000000e+00> : vector<16x32xf32>
    %90 = tpu.matmul %88, %89, %cst_51 {dimension_numbers = #tpu.dot_dimension_numbers<[1], [0], [0], [1], [0, 0, 1, 1], [], []>} : vector<16x32xf32>, vector<32x32xf32>, vector<16x32xf32> -> vector<16x32xf32>
    %c8_52 = arith.constant 8 : index
    %c0_53 = arith.constant 0 : index
    %91 = vector.load %arg9[%c8_52, %c0_53] : memref<32x32xf32, #tpu.memory_space<vmem>>, vector<1x32xf32>
    %92 = vector.broadcast %91 : vector<1x32xf32> to vector<16x32xf32>
    %93 = arith.addf %90, %92 : vector<16x32xf32>
    %c264 = arith.constant 264 : index
    %c0_54 = arith.constant 0 : index
    %94 = vector.load %arg8[%c264, %c0_54] : memref<552x32xf32, #tpu.memory_space<vmem>>, vector<32x32xf32>
    %cst_55 = arith.constant dense<0.000000e+00> : vector<16x32xf32>
    %95 = tpu.matmul %88, %94, %cst_55 {dimension_numbers = #tpu.dot_dimension_numbers<[1], [0], [0], [1], [0, 0, 1, 1], [], []>} : vector<16x32xf32>, vector<32x32xf32>, vector<16x32xf32> -> vector<16x32xf32>
    %c9 = arith.constant 9 : index
    %c0_56 = arith.constant 0 : index
    %96 = vector.load %arg9[%c9, %c0_56] : memref<32x32xf32, #tpu.memory_space<vmem>>, vector<1x32xf32>
    %97 = vector.broadcast %96 : vector<1x32xf32> to vector<16x32xf32>
    %98 = arith.addf %95, %97 : vector<16x32xf32>
    %cst_57 = arith.constant 0.000000e+00 : f32
    %99 = vector.broadcast %cst_57 : f32 to vector<16x32xf32>
    %100 = arith.maximumf %98, %99 : vector<16x32xf32>
    %101 = arith.mulf %93, %100 : vector<16x32xf32>
    %c296 = arith.constant 296 : index
    %c0_58 = arith.constant 0 : index
    %102 = vector.load %arg8[%c296, %c0_58] : memref<552x32xf32, #tpu.memory_space<vmem>>, vector<32x32xf32>
    %cst_59 = arith.constant dense<0.000000e+00> : vector<16x32xf32>
    %103 = tpu.matmul %101, %102, %cst_59 {dimension_numbers = #tpu.dot_dimension_numbers<[1], [0], [0], [1], [0, 0, 1, 1], [], []>} : vector<16x32xf32>, vector<32x32xf32>, vector<16x32xf32> -> vector<16x32xf32>
    %104 = arith.addf %66, %103 : vector<16x32xf32>
    %c10 = arith.constant 10 : index
    %c0_60 = arith.constant 0 : index
    %105 = vector.load %arg9[%c10, %c0_60] : memref<32x32xf32, #tpu.memory_space<vmem>>, vector<1x32xf32>
    %106 = vector.broadcast %105 : vector<1x32xf32> to vector<16x32xf32>
    %107 = arith.addf %104, %106 : vector<16x32xf32>
    %c12 = arith.constant 12 : index
    %c0_61 = arith.constant 0 : index
    %108 = vector.load %arg9[%c12, %c0_61] : memref<32x32xf32, #tpu.memory_space<vmem>>, vector<1x32xf32>
    %c13 = arith.constant 13 : index
    %c0_62 = arith.constant 0 : index
    %109 = vector.load %arg9[%c13, %c0_62] : memref<32x32xf32, #tpu.memory_space<vmem>>, vector<1x32xf32>
    %cst_63 = arith.constant dense<0.000000e+00> : vector<16xf32>
    %110 = vector.multi_reduction <add>, %107, %cst_63 [1] : vector<16x32xf32> to vector<16xf32>
    %111 = vector.shape_cast %110 : vector<16xf32> to vector<16x1xf32>
    %cst_64 = arith.constant 3.200000e+01 : f32
    %112 = vector.broadcast %cst_64 : f32 to vector<16x1xf32>
    %113 = arith.divf %111, %112 : vector<16x1xf32>
    %114 = vector.broadcast %113 : vector<16x1xf32> to vector<16x32xf32>
    %115 = arith.subf %107, %114 : vector<16x32xf32>
    %116 = arith.mulf %115, %115 : vector<16x32xf32>
    %cst_65 = arith.constant dense<0.000000e+00> : vector<16xf32>
    %117 = vector.multi_reduction <add>, %116, %cst_65 [1] : vector<16x32xf32> to vector<16xf32>
    %118 = vector.shape_cast %117 : vector<16xf32> to vector<16x1xf32>
    %cst_66 = arith.constant 3.200000e+01 : f32
    %119 = vector.broadcast %cst_66 : f32 to vector<16x1xf32>
    %120 = arith.divf %118, %119 : vector<16x1xf32>
    %cst_67 = arith.constant 9.99999974E-6 : f32
    %121 = vector.broadcast %cst_67 : f32 to vector<16x1xf32>
    %122 = arith.addf %120, %121 : vector<16x1xf32>
    %123 = math.rsqrt %122 : vector<16x1xf32>
    %124 = vector.broadcast %123 : vector<16x1xf32> to vector<16x32xf32>
    %125 = arith.mulf %115, %124 : vector<16x32xf32>
    %126 = vector.broadcast %108 : vector<1x32xf32> to vector<16x32xf32>
    %127 = arith.mulf %125, %126 : vector<16x32xf32>
    %128 = vector.broadcast %109 : vector<1x32xf32> to vector<16x32xf32>
    %129 = arith.addf %127, %128 : vector<16x32xf32>
    %c328 = arith.constant 328 : index
    %c0_68 = arith.constant 0 : index
    %130 = vector.load %arg8[%c328, %c0_68] : memref<552x32xf32, #tpu.memory_space<vmem>>, vector<32x32xf32>
    %cst_69 = arith.constant dense<0.000000e+00> : vector<16x32xf32>
    %131 = tpu.matmul %129, %130, %cst_69 {dimension_numbers = #tpu.dot_dimension_numbers<[1], [0], [0], [1], [0, 0, 1, 1], [], []>} : vector<16x32xf32>, vector<32x32xf32>, vector<16x32xf32> -> vector<16x32xf32>
    %c14 = arith.constant 14 : index
    %c0_70 = arith.constant 0 : index
    %132 = vector.load %arg9[%c14, %c0_70] : memref<32x32xf32, #tpu.memory_space<vmem>>, vector<1x32xf32>
    %133 = vector.broadcast %132 : vector<1x32xf32> to vector<16x32xf32>
    %134 = arith.addf %131, %133 : vector<16x32xf32>
    %c360 = arith.constant 360 : index
    %c0_71 = arith.constant 0 : index
    %135 = vector.load %arg8[%c360, %c0_71] : memref<552x32xf32, #tpu.memory_space<vmem>>, vector<32x32xf32>
    %cst_72 = arith.constant dense<0.000000e+00> : vector<16x32xf32>
    %136 = tpu.matmul %129, %135, %cst_72 {dimension_numbers = #tpu.dot_dimension_numbers<[1], [0], [0], [1], [0, 0, 1, 1], [], []>} : vector<16x32xf32>, vector<32x32xf32>, vector<16x32xf32> -> vector<16x32xf32>
    %c15 = arith.constant 15 : index
    %c0_73 = arith.constant 0 : index
    %137 = vector.load %arg9[%c15, %c0_73] : memref<32x32xf32, #tpu.memory_space<vmem>>, vector<1x32xf32>
    %138 = vector.broadcast %137 : vector<1x32xf32> to vector<16x32xf32>
    %139 = arith.addf %136, %138 : vector<16x32xf32>
    %c392 = arith.constant 392 : index
    %c0_74 = arith.constant 0 : index
    %140 = vector.load %arg8[%c392, %c0_74] : memref<552x32xf32, #tpu.memory_space<vmem>>, vector<32x32xf32>
    %cst_75 = arith.constant dense<0.000000e+00> : vector<16x32xf32>
    %141 = tpu.matmul %129, %140, %cst_75 {dimension_numbers = #tpu.dot_dimension_numbers<[1], [0], [0], [1], [0, 0, 1, 1], [], []>} : vector<16x32xf32>, vector<32x32xf32>, vector<16x32xf32> -> vector<16x32xf32>
    %c16_76 = arith.constant 16 : index
    %c0_77 = arith.constant 0 : index
    %142 = vector.load %arg9[%c16_76, %c0_77] : memref<32x32xf32, #tpu.memory_space<vmem>>, vector<1x32xf32>
    %143 = vector.broadcast %142 : vector<1x32xf32> to vector<16x32xf32>
    %144 = arith.addf %141, %143 : vector<16x32xf32>
    %cst_78 = arith.constant dense<0.000000e+00> : vector<64x32xf32>
    %145 = tpu.matmul %1, %139, %cst_78 {dimension_numbers = #tpu.dot_dimension_numbers<[1], [0], [0], [1], [0, 0, 1, 1], [], []>} : vector<64x16xf32>, vector<16x32xf32>, vector<64x32xf32> -> vector<64x32xf32>
    %146 = arith.mulf %145, %2 : vector<64x32xf32>
    %cst_79 = arith.constant dense<0.000000e+00> : vector<64x32xf32>
    %147 = tpu.matmul %1, %144, %cst_79 {dimension_numbers = #tpu.dot_dimension_numbers<[1], [0], [0], [1], [0, 0, 1, 1], [], []>} : vector<64x16xf32>, vector<16x32xf32>, vector<64x32xf32> -> vector<64x32xf32>
    %148 = arith.mulf %147, %2 : vector<64x32xf32>
    %cst_80 = arith.constant dense<0.000000e+00> : vector<16x64xf32>
    %149 = tpu.matmul %134, %146, %cst_80 {dimension_numbers = #tpu.dot_dimension_numbers<[1], [1], [0], [0], [0, 0, 1, 0], [], []>} : vector<16x32xf32>, vector<64x32xf32>, vector<16x64xf32> -> vector<16x64xf32>
    %cst_81 = arith.constant 0.353553385 : f32
    %150 = vector.broadcast %cst_81 : f32 to vector<16x64xf32>
    %151 = arith.mulf %149, %150 : vector<16x64xf32>
    %152 = arith.addf %151, %13 : vector<16x64xf32>
    %cst_82 = arith.constant dense<0xFF800000> : vector<16xf32>
    %153 = vector.multi_reduction <maximumf>, %152, %cst_82 [1] : vector<16x64xf32> to vector<16xf32>
    %154 = vector.shape_cast %153 : vector<16xf32> to vector<16x1xf32>
    %155 = vector.broadcast %154 : vector<16x1xf32> to vector<16x64xf32>
    %156 = arith.subf %152, %155 : vector<16x64xf32>
    %157 = math.exp %156 : vector<16x64xf32>
    %cst_83 = arith.constant dense<0.000000e+00> : vector<16x64xf32>
    %158 = tpu.matmul %157, %4, %cst_83 {dimension_numbers = #tpu.dot_dimension_numbers<[1], [0], [0], [1], [0, 0, 1, 1], [], []>} : vector<16x64xf32>, vector<64x64xf32>, vector<16x64xf32> -> vector<16x64xf32>
    %cst_84 = arith.constant 9.99999968E-21 : f32
    %159 = vector.broadcast %cst_84 : f32 to vector<16x64xf32>
    %160 = arith.maximumf %158, %159 : vector<16x64xf32>
    %161 = tpu.reciprocal %160 {approx = true} : vector<16x64xf32> -> vector<16x64xf32>
    %162 = arith.mulf %157, %161 : vector<16x64xf32>
    %cst_85 = arith.constant dense<0.000000e+00> : vector<16x32xf32>
    %163 = tpu.matmul %162, %148, %cst_85 {dimension_numbers = #tpu.dot_dimension_numbers<[1], [0], [0], [1], [0, 0, 1, 1], [], []>} : vector<16x64xf32>, vector<64x32xf32>, vector<16x32xf32> -> vector<16x32xf32>
    %c424 = arith.constant 424 : index
    %c0_86 = arith.constant 0 : index
    %164 = vector.load %arg8[%c424, %c0_86] : memref<552x32xf32, #tpu.memory_space<vmem>>, vector<32x32xf32>
    %cst_87 = arith.constant dense<0.000000e+00> : vector<16x32xf32>
    %165 = tpu.matmul %163, %164, %cst_87 {dimension_numbers = #tpu.dot_dimension_numbers<[1], [0], [0], [1], [0, 0, 1, 1], [], []>} : vector<16x32xf32>, vector<32x32xf32>, vector<16x32xf32> -> vector<16x32xf32>
    %c17 = arith.constant 17 : index
    %c0_88 = arith.constant 0 : index
    %166 = vector.load %arg9[%c17, %c0_88] : memref<32x32xf32, #tpu.memory_space<vmem>>, vector<1x32xf32>
    %167 = vector.broadcast %166 : vector<1x32xf32> to vector<16x32xf32>
    %168 = arith.addf %165, %167 : vector<16x32xf32>
    %169 = arith.addf %107, %168 : vector<16x32xf32>
    %c18 = arith.constant 18 : index
    %c0_89 = arith.constant 0 : index
    %170 = vector.load %arg9[%c18, %c0_89] : memref<32x32xf32, #tpu.memory_space<vmem>>, vector<1x32xf32>
    %c19 = arith.constant 19 : index
    %c0_90 = arith.constant 0 : index
    %171 = vector.load %arg9[%c19, %c0_90] : memref<32x32xf32, #tpu.memory_space<vmem>>, vector<1x32xf32>
    %cst_91 = arith.constant dense<0.000000e+00> : vector<16xf32>
    %172 = vector.multi_reduction <add>, %169, %cst_91 [1] : vector<16x32xf32> to vector<16xf32>
    %173 = vector.shape_cast %172 : vector<16xf32> to vector<16x1xf32>
    %cst_92 = arith.constant 3.200000e+01 : f32
    %174 = vector.broadcast %cst_92 : f32 to vector<16x1xf32>
    %175 = arith.divf %173, %174 : vector<16x1xf32>
    %176 = vector.broadcast %175 : vector<16x1xf32> to vector<16x32xf32>
    %177 = arith.subf %169, %176 : vector<16x32xf32>
    %178 = arith.mulf %177, %177 : vector<16x32xf32>
    %cst_93 = arith.constant dense<0.000000e+00> : vector<16xf32>
    %179 = vector.multi_reduction <add>, %178, %cst_93 [1] : vector<16x32xf32> to vector<16xf32>
    %180 = vector.shape_cast %179 : vector<16xf32> to vector<16x1xf32>
    %cst_94 = arith.constant 3.200000e+01 : f32
    %181 = vector.broadcast %cst_94 : f32 to vector<16x1xf32>
    %182 = arith.divf %180, %181 : vector<16x1xf32>
    %cst_95 = arith.constant 9.99999974E-6 : f32
    %183 = vector.broadcast %cst_95 : f32 to vector<16x1xf32>
    %184 = arith.addf %182, %183 : vector<16x1xf32>
    %185 = math.rsqrt %184 : vector<16x1xf32>
    %186 = vector.broadcast %185 : vector<16x1xf32> to vector<16x32xf32>
    %187 = arith.mulf %177, %186 : vector<16x32xf32>
    %188 = vector.broadcast %170 : vector<1x32xf32> to vector<16x32xf32>
    %189 = arith.mulf %187, %188 : vector<16x32xf32>
    %190 = vector.broadcast %171 : vector<1x32xf32> to vector<16x32xf32>
    %191 = arith.addf %189, %190 : vector<16x32xf32>
    %c456 = arith.constant 456 : index
    %c0_96 = arith.constant 0 : index
    %192 = vector.load %arg8[%c456, %c0_96] : memref<552x32xf32, #tpu.memory_space<vmem>>, vector<32x32xf32>
    %cst_97 = arith.constant dense<0.000000e+00> : vector<16x32xf32>
    %193 = tpu.matmul %191, %192, %cst_97 {dimension_numbers = #tpu.dot_dimension_numbers<[1], [0], [0], [1], [0, 0, 1, 1], [], []>} : vector<16x32xf32>, vector<32x32xf32>, vector<16x32xf32> -> vector<16x32xf32>
    %c20 = arith.constant 20 : index
    %c0_98 = arith.constant 0 : index
    %194 = vector.load %arg9[%c20, %c0_98] : memref<32x32xf32, #tpu.memory_space<vmem>>, vector<1x32xf32>
    %195 = vector.broadcast %194 : vector<1x32xf32> to vector<16x32xf32>
    %196 = arith.addf %193, %195 : vector<16x32xf32>
    %c488 = arith.constant 488 : index
    %c0_99 = arith.constant 0 : index
    %197 = vector.load %arg8[%c488, %c0_99] : memref<552x32xf32, #tpu.memory_space<vmem>>, vector<32x32xf32>
    %cst_100 = arith.constant dense<0.000000e+00> : vector<16x32xf32>
    %198 = tpu.matmul %191, %197, %cst_100 {dimension_numbers = #tpu.dot_dimension_numbers<[1], [0], [0], [1], [0, 0, 1, 1], [], []>} : vector<16x32xf32>, vector<32x32xf32>, vector<16x32xf32> -> vector<16x32xf32>
    %c21 = arith.constant 21 : index
    %c0_101 = arith.constant 0 : index
    %199 = vector.load %arg9[%c21, %c0_101] : memref<32x32xf32, #tpu.memory_space<vmem>>, vector<1x32xf32>
    %200 = vector.broadcast %199 : vector<1x32xf32> to vector<16x32xf32>
    %201 = arith.addf %198, %200 : vector<16x32xf32>
    %cst_102 = arith.constant 0.000000e+00 : f32
    %202 = vector.broadcast %cst_102 : f32 to vector<16x32xf32>
    %203 = arith.maximumf %201, %202 : vector<16x32xf32>
    %204 = arith.mulf %196, %203 : vector<16x32xf32>
    %c520 = arith.constant 520 : index
    %c0_103 = arith.constant 0 : index
    %205 = vector.load %arg8[%c520, %c0_103] : memref<552x32xf32, #tpu.memory_space<vmem>>, vector<32x32xf32>
    %cst_104 = arith.constant dense<0.000000e+00> : vector<16x32xf32>
    %206 = tpu.matmul %204, %205, %cst_104 {dimension_numbers = #tpu.dot_dimension_numbers<[1], [0], [0], [1], [0, 0, 1, 1], [], []>} : vector<16x32xf32>, vector<32x32xf32>, vector<16x32xf32> -> vector<16x32xf32>
    %207 = arith.addf %169, %206 : vector<16x32xf32>
    %c22 = arith.constant 22 : index
    %c0_105 = arith.constant 0 : index
    %208 = vector.load %arg9[%c22, %c0_105] : memref<32x32xf32, #tpu.memory_space<vmem>>, vector<1x32xf32>
    %209 = vector.broadcast %208 : vector<1x32xf32> to vector<16x32xf32>
    %210 = arith.addf %207, %209 : vector<16x32xf32>
    %c88 = arith.constant 88 : index
    %c0_106 = arith.constant 0 : index
    %211 = vector.load %arg8[%c88, %c0_106] : memref<552x32xf32, #tpu.memory_space<vmem>>, vector<16x32xf32>
    %212 = arith.mulf %210, %211 : vector<16x32xf32>
    %cst_107 = arith.constant dense<0.000000e+00> : vector<16xf32>
    %213 = vector.multi_reduction <add>, %212, %cst_107 [1] : vector<16x32xf32> to vector<16xf32>
    %214 = vector.shape_cast %213 : vector<16xf32> to vector<16x1xf32>
    %cst_108 = arith.constant 1.000000e+00 : f32
    %215 = vector.broadcast %cst_108 : f32 to vector<1x16xf32>
    %216 = vector.broadcast %214 : vector<16x1xf32> to vector<16x2xf32>
    %217 = arith.mulf %216, %0 : vector<16x2xf32>
    %cst_109 = arith.constant dense<0.000000e+00> : vector<1x2xf32>
    %218 = tpu.matmul %215, %217, %cst_109 {dimension_numbers = #tpu.dot_dimension_numbers<[1], [0], [0], [1], [0, 0, 1, 1], [], []>} : vector<1x16xf32>, vector<16x2xf32>, vector<1x2xf32> -> vector<1x2xf32>
    %c24_110 = arith.constant 24 : index
    %c0_111 = arith.constant 0 : index
    %219 = vector.load %arg9[%c24_110, %c0_111] : memref<32x32xf32, #tpu.memory_space<vmem>>, vector<1x32xf32>
    %220 = vector.extract_strided_slice %219 {offsets = [0, 0], sizes = [1, 2], strides = [1, 1]} : vector<1x32xf32> to vector<1x2xf32>
    %221 = arith.addf %218, %220 : vector<1x2xf32>
    %c0_112 = arith.constant 0 : index
    %c0_113 = arith.constant 0 : index
    %222 = vector.load %arg10[%c0_112, %c0_113] : memref<1x2xf32, #tpu.memory_space<vmem>>, vector<1x2xf32>
    tpu.vector_store %arg10[%c0_112, %c0_113], %221 {strides = array<i32>} : memref<1x2xf32, #tpu.memory_space<vmem>>, vector<1x2xf32>,
    return
  }
  func.func @transform_0(%arg0: i32) -> (i32, i32) {
    %c0_i32 = arith.constant 0 : i32
    %c0_i32_0 = arith.constant 0 : i32
    %c0_i32_1 = arith.constant 0 : i32
    return %c0_i32, %c0_i32_0 : i32, i32
  }
  func.func @transform_1(%arg0: i32) -> (i32, i32) {
    %c0_i32 = arith.constant 0 : i32
    %c0_i32_0 = arith.constant 0 : i32
    %c0_i32_1 = arith.constant 0 : i32
    return %c0_i32, %c0_i32_0 : i32, i32
  }
  func.func @transform_2(%arg0: i32) -> (i32, i32) {
    %c0_i32 = arith.constant 0 : i32
    %c0_i32_0 = arith.constant 0 : i32
    %c0_i32_1 = arith.constant 0 : i32
    return %c0_i32, %c0_i32_0 : i32, i32
  }
  func.func @transform_3(%arg0: i32) -> (i32, i32) {
    %c0_i32 = arith.constant 0 : i32
    %c0_i32_0 = arith.constant 0 : i32
    %c0_i32_1 = arith.constant 0 : i32
    return %c0_i32, %c0_i32_0 : i32, i32
  }
  func.func @transform_4(%arg0: i32) -> (i32, i32) {
    %c0_i32 = arith.constant 0 : i32
    %c0_i32_0 = arith.constant 0 : i32
    %c0_i32_1 = arith.constant 0 : i32
    return %c0_i32, %c0_i32_0 : i32, i32
  }
  func.func @transform_5(%arg0: i32) -> (i32, i32) {
    %c0_i32 = arith.constant 0 : i32
    %c0_i32_0 = arith.constant 0 : i32
    %c0_i32_1 = arith.constant 0 : i32
    return %c0_i32, %c0_i32_0 : i32, i32
  }
  func.func @transform_6(%arg0: i32) -> (i32, i32) {
    %c0_i32 = arith.constant 0 : i32
    %c0_i32_0 = arith.constant 0 : i32
    %c0_i32_1 = arith.constant 0 : i32
    return %c0_i32, %c0_i32_0 : i32, i32
  }
  func.func @transform_7(%arg0: i32) -> (i32, i32) {
    %c0_i32 = arith.constant 0 : i32
    %c0_i32_0 = arith.constant 0 : i32
    %c0_i32_1 = arith.constant 0 : i32
    return %c0_i32, %c0_i32_0 : i32, i32
  }
  func.func @transform_8(%arg0: i32) -> (i32, i32) {
    %c0_i32 = arith.constant 0 : i32
    %c0_i32_0 = arith.constant 0 : i32
    %c0_i32_1 = arith.constant 0 : i32
    return %c0_i32, %c0_i32_0 : i32, i32
  }
  func.func @transform_9(%arg0: i32) -> (i32, i32) {
    %c0_i32 = arith.constant 0 : i32
    %c0_i32_0 = arith.constant 0 : i32
    %c0_i32_1 = arith.constant 0 : i32
    return %c0_i32, %c0_i32_0 : i32, i32
  }
}

</mosaic_0001>

<bundles_post_ra>
// kernel: transformer_forward.1
= control target key start
LH: loop header
LB: loop body
LE: loop exit
PB: predicated region body
PF: predicated region fallthrough
CT: control target
= control target key end

     0   :  { %vm69_vm0 = vcmask 1041408   ;;  %v3946_v2 = vmov 0   ;;  %vm62_vm1 = vcmask 15360   ;;  %s4688_s0 = inlined_call_operand.vmem [shape: f32[16,8], index: 0, kind: input, shape index: {}]   ;;  %s4689_s1 = inlined_call_operand.vmem [shape: s32[16,1], index: 1, kind: input, shape index: {}]   ;;  %s4690_s2 = inlined_call_operand.vmem [shape: f32[2,32], index: 2, kind: input, shape index: {}]   ;;  %s4691_s3 = inlined_call_operand.vmem [shape: f32[2,1], index: 3, kind: input, shape index: {}]   ;;  %s4692_s4 = inlined_call_operand.vmem [shape: f32[16,2], index: 4, kind: input, shape index: {}]   ;;  %s4693_s5 = inlined_call_operand.vmem [shape: f32[64,16], index: 5, kind: input, shape index: {}]   ;;  %s4694_s6 = inlined_call_operand.vmem [shape: f32[80,64], index: 6, kind: input, shape index: {}]   ;;  %s4695_s7 = inlined_call_operand.vmem [shape: f32[552,32], index: 7, kind: input, shape index: {}]   ;;  %s4696_s8 = inlined_call_operand.vmem [shape: f32[32,32], index: 8, kind: input, shape index: {}]   ;;  %s4697_s9 = inlined_call_operand.hbm [shape: f32[1,2], index: 9, kind: output, shape index: {}]  }
   0x1   :  { %v246_v0 = vld [vmem:[%s4689_s1] sm:$0xff]  ;;  %3890 = vset.pattern.permute.xlu0 %v3946_v2  ;;  %v34_v4 = vld [vmem:[%s4692_s4 + $0x8] sm:$0xff]  ;;  %v261_v6 = vld [vmem:[%s4695_s7 + $0x10] sm:$0xff] }
   0x2   :  { %v148_v1 = vld [vmem:[%s4690_s2] sm:$0x3]  ;;  %v260_v5 = vld [vmem:[%s4695_s7 + $0x8] sm:$0xff]  ;;  %249 = vperm.xlu0 %3890, %v246_v0  }
   0x3   :  { %3277 = vmatprep.subr.msk.mxu1 %vm69_vm0, %v148_v1  ;;  %v33_v3 = vld [vmem:[%s4692_s4] sm:$0xff] }
   0x4   :  { %3278 = vmatpush3.msk.msra.mxu1 %vm69_vm0, %v148_v1 }
   0x5   :  { %14 = vsyncpa [#allocation3], 0  ;;  %v247_v7 = vld [vmem:[%s4689_s1 + $0x8] sm:$0xff]  ;;  %3279 = vmatprep.mubr.msk.f32.mxu1 %vm62_vm1, %v33_v3  ;;  %v3633_v8 = vpack.c.bf16 %v261_v6, %v260_v5  ;;  %3274 = vmatprep.mubr.msk.f32.mxu0 %vm62_vm1, %v33_v3  ;;  %v243_v9 = vld [vmem:[%s4695_s7] sm:$0xff]  ;;  %v244_v17 = vlaneseq  ;;  %vm262_vm2 = vcmask 130048   ;;  %v3947_v20 = vmov 0.0  }
   0x6   :  { %3280 = vmatmul.mubr.msk.f32.vlgmr.msra.gmra.mrb[0].mxu1 %vm62_vm1, %v34_v4  ;;  %3891 = vset.pattern.permute.xlu1 %v3946_v2  ;;  %v61_v10 = vld [vmem:[%s4691_s3] sm:$0x3]  ;;  %v428_v11 = vld [vmem:[%s4695_s7 + $0x68] sm:$0xff]  ;;  %v429_v12 = vld [vmem:[%s4695_s7 + $0x70] sm:$0xff]  ;;  %vm344_vm5 = vcmask 64512   ;;  %vm437_vm6 = vcmask 261120  }
   0x7   :  { %3634 = vmatprep.subr.bf16.mxu1 %v3633_v8  ;;  %252 = vperm.xlu0 %3890, %v247_v7   ;;  %v3637_v13 = vpack.c.bf16 %v429_v12, %v428_v11  ;;  %v430_v14 = vld [vmem:[%s4695_s7 + $0x78] sm:$0xff]  ;;  %v431_v15 = vld [vmem:[%s4695_s7 + $0x80] sm:$0xff]  ;;  %v245_v18 = vand.u32 127, %v244_v17  ;;  %v603_v22 = vld [vmem:[%s4695_s7 + $0xa8] sm:$0xff]  ;;  %vm1046_vm10 = vcmask 523264   ;;  %vm3949_vm11 = vmmov 0  }
   0x8   :  { %3636 = vmatpush3.bf16.msra.mxu1 %v3633_v8  ;;  %3272 = vmatprep.subr.msk.mxu0 %vm69_vm0, %v61_v10  ;;  %v3641_v16 = vpack.c.bf16 %v431_v15, %v430_v14  ;;  %v604_v23 = vld [vmem:[%s4695_s7 + $0xb0] sm:$0xff]  ;;  %v241_v25 = vld [vmem:[%s4688_s0] sm:$0xff]  ;;  %v605_v28 = vld [vmem:[%s4695_s7 + $0xb8] sm:$0xff]  ;;  %s3951_s30 = smov [#allocation2]   ;;  %vm2935_vm12 = vcmask 8192  }
   0x9   :  { %3289 = vmatprep.subr.mxu1 %v243_v9  ;;  %3273 = vmatpush3.msk.msra.mxu0 %vm69_vm0, %v61_v10  ;;  %v3653_v26 = vpack.c.bf16 %v604_v23, %v603_v22  ;;  %v606_v29 = vld [vmem:[%s4695_s7 + $0xc0] sm:$0xff]  ;;  %v242_v30 = vld [vmem:[%s4688_s0 + $0x8] sm:$0xff]  ;;  %v520_v33 = vld [vmem:[%s4695_s7 + $0x90] sm:$0xff]  ;;  %s2943_s10 = sshll.u32 %s3951_s30, 4  ;;  %s2944_s10 = int_to_ptr.vmem [resolvable:$true] %s2943_s10 }
   0xa   :  { %3275 = vmatmul.mubr.msk.f32.vlgmr.msra.gmra.mrb[0].mxu0 %vm62_vm1, %v34_v4  ;;  %3638 = vmatprep.subr.bf16.mxu0 %v3637_v13  ;;  %v3657_v31 = vpack.c.bf16 %v606_v29, %v605_v28  ;;  %v519_v32 = vld [vmem:[%s4695_s7 + $0x88] sm:$0xff]  ;;  %v521_v37 = vld [vmem:[%s4695_s7 + $0x98] sm:$0xff]  ;;  %v522_v38 = vld [vmem:[%s4695_s7 + $0xa0] sm:$0xff]  ;;  %s3922_s11 = scalar_lea.vmem %s2944_s10, 16  ;;  %p3927_p1 = scmp.lt.s32.totalorder %s2944_s10, %s2944_s10 }
   0xb   :  { %3640 = vmatpush3.bf16.msra.mxu0 %v3637_v13  ;;  %v3645_v34 = vpack.c.bf16 %v520_v33, %v519_v32  ;;  %v3649_v41 = vpack.c.bf16 %v522_v38, %v521_v37  ;;  %v4102_v42 = vld [vmem:[%s4693_s5] sm:$0xff]  ;;  %v4122_v57 = vld [vmem:[%s4693_s5 + $0x8] sm:$0xff]  ;;  %v4127_v59 = vld [vmem:[%s4693_s5 + $0x10] sm:$0xff]  ;;  %p3923_p0 = scmp.ne.s32.totalorder %s2944_s10, %s3922_s11 }
   0xc   :  { %3642 = vmatprep.subr.bf16.mxu0 %v3641_v16  ;;  %v2963_v43 = vld [vmem:[%s4696_s8 + $0x2] ss:$0 sm:$0xff]  ;;  %v2969_v44 = vld [vmem:[%s4696_s8 + $0x4] ss:$0 sm:$0xff]  ;;  %v2966_v53 = vld [vmem:[%s4696_s8 + $0x3] ss:$0 sm:$0xff] }
   0xd   :  { %v4136_v61 = vld [vmem:[%s4693_s5 + $0x18] sm:$0xff]  ;;  %v4141_v62 = vld [vmem:[%s4693_s5 + $0x20] sm:$0xff]  ;;  %v4150_v63 = vld [vmem:[%s4693_s5 + $0x28] sm:$0xff] }
   0xe   :  { %v4157_v0 = vld [vmem:[%s4693_s5 + $0x30] sm:$0xff]  ;;  %v4168_v1 = vld [vmem:[%s4693_s5 + $0x38] sm:$0xff]  ;;  %v4186_v3 = vld [vmem:[%s4695_s7 + $0x20] sm:$0xff] }
   0xf   :  { %3644 = vmatpush3.bf16.msra.mxu0 %v3641_v16  ;;  %v4191_v4 = vld [vmem:[%s4695_s7 + $0x18] sm:$0xff]  ;;  %vm4202_vm7 = vmpackc.low %vm437_vm6, %vm437_vm6  ;;  %v4209_v11 = vld [vmem:[%s4695_s7 + $0x28] sm:$0xff] }
  0x10   :  { %3646 = vmatprep.subr.bf16.mxu0 %v3645_v34  ;;  %v4218_v17 = vld [vmem:[%s4695_s7 + $0x40] sm:$0xff] }
  0x81   :  { %v250_v19 = vpop.permute.xlu0 %249 }
  0x82   :  { %vm254_vm3 = vcmp.eq.s32.totalorder %v245_v18, %v250_v19 }
  0x83   :  { %v2957_v21 = vsel %vm254_vm3, 1.0, %v3947_v20 }
  0x84   :  { %3286 = vmatprep.mubr.msk.f32.mxu1 %vm262_vm2, %v2957_v21 }
  0x86   :  { %v253_v24 = vpop.permute.xlu0 %252 }
  0x87   :  { %vm255_vm4 = vcmp.eq.s32.totalorder %v245_v18, %v253_v24  ;;  %v4225_v18 = vld [vmem:[%s4695_s7 + $0x38] sm:$0xff] }
  0x88   :  { %v2958_v27 = vsel %vm255_vm4, 1.0, %v3947_v20 }
  0x89   :  { %3287 = vmatmul.mubr.msk.f32.vlgmr.msra.gmra.mrb[0].mxu1 %vm262_vm2, %v2958_v27 }
  0x8a   :  { %3290 = vmatpush3.msra.mxu1 %v243_v9  ;;  %3291 = vmatprep.mubr.msk.f32.mxu1 %vm344_vm5, %v241_v25  ;;  %v4198_v9 = vld [vmem:[%s4695_s7 + $0x30] sm:$0xff] }
  0x8b   :  { %3654 = vmatprep.subr.bf16.mxu1 %v3653_v26  ;;  %v4234_v25 = vld [vmem:[%s4695_s7 + $0x50] sm:$0xff] }
  0x91   :  { %3292 = vmatmul.mubr.msk.f32.vlgmr.msra.gmra.mrb[0].mxu1 %vm344_vm5, %v242_v30 }
  0x92   :  { %3656 = vmatpush3.bf16.msra.mxu1 %v3653_v26  ;;  %v4239_v26 = vld [vmem:[%s4695_s7 + $0x48] sm:$0xff] }
  0x93   :  { %3658 = vmatprep.subr.bf16.mxu1 %v3657_v31 }
  0x96   :  { %3660 = vmatpush3.bf16.msra.mxu1 %v3657_v31 }
  0xdd   :  { %v3276_v35 = vpop.f32.mrb[0].mxu0 }
  0xde   :  { %v139_v36 = vpop.f32.mrb[1].mxu0 }
  0xdf   :  { %229 = vperm.xlu1 %3891, %v139_v36   ;;  %v51_v36 = vld [vmem:[%s4694_s6] sm:$0xff] }
  0xe3   :  { %234 = vperm.xlu1 %3891, %v3276_v35  }
 0x15e   :  { %v230_v33 = vpop.permute.xlu1 %229 }
 0x15f   :  { %vm237_vm9 = vcmp.ge.f32.partialorder %v51_v36, %v230_v33 }
 0x162   :  { %v235_v35 = vpop.permute.xlu1 %234 }
 0x164   :  { %v4083_v39 = vpop.f32.mrb[0].mxu1 }
 0x165   :  { %v4085_v40 = vpop.f32.mrb[1].mxu1 }
 0x166   :  { %3302 = vmatprep.mubr.msk.f32.mxu0 %vm437_vm6, %v4085_v40  ;;  %3324 = vmatprep.mubr.msk.f32.mxu1 %vm437_vm6, %v4085_v40 }
 0x167   :  { %3303 = vmatmul.mubr.msk.f32.vlgmr.msra.gmra.mrb[2].mxu0 %vm437_vm6, %v4083_v39  ;;  %3325 = vmatmul.mubr.msk.f32.vlgmr.msra.gmra.mrb[2].mxu1 %vm437_vm6, %v4083_v39 }
 0x168   :  { %3648 = vmatpush3.bf16.msra.mxu0 %v3645_v34  ;;  %3313 = vmatprep.mubr.msk.f32.mxu0 %vm437_vm6, %v4085_v40  ;;  %v52_v34 = vld [vmem:[%s4694_s6 + $0x8] sm:$0xff] }
 0x169   :  { %3650 = vmatprep.subr.bf16.mxu0 %v3649_v41  ;;  %3347 = vmatprep.mubr.msk.f32.mxu1 %vm262_vm2, %v4102_v42  ;;  %vm238_vm8 = vcmp.ge.f32.partialorder %v52_v34, %v235_v35 }
 0x16c   :  { %3652 = vmatpush3.bf16.msra.mxu0 %v3649_v41 }
 0x16f   :  { %3314 = vmatmul.mubr.msk.f32.vlgmr.msra.gmra.mrb[4].mxu0 %vm437_vm6, %v4083_v39 }
 0x170   :  { %3331 = vmatprep.mubr.msk.f32.mxu0 %vm262_vm2, %v4102_v42 }
 0x23a   :  { %v3304_v45 = vpop.f32.mrb[2].mxu0  ;;  %v3326_v46 = vpop.f32.mrb[2].mxu1 }
 0x23b   :  { %v4114_v47 = vadd.f32 %v3304_v45, %v2963_v43  ;;  %v684_v48 = vadd.f32 %v3326_v46, %v2969_v44  ;;  %v510_v49 = vpop.f32.mrb[3].mxu0  ;;  %v678_v50 = vpop.f32.mrb[3].mxu1  ;;  %v4265_v45 = vsel %vm237_vm9, -1e+30, %v3947_v20 }
 0x23c   :  { %v679_v51 = vadd.f32 %v2969_v44, %v678_v50  ;;  %v511_v2 = vadd.f32 %v2963_v43, %v510_v49  ;;  %v4262_v43 = vsel %vm238_vm8, -1e+30, %v3947_v20  ;;  %v53_v50 = vld [vmem:[%s4694_s6 + $0x10] sm:$0xff] }
 0x23e   :  { %v3665_v52 = vpack.c.bf16 %v684_v48, %v679_v51  ;;  %v54_v51 = vld [vmem:[%s4694_s6 + $0x18] sm:$0xff] }
 0x240   :  { %3666 = vmatprep.subr.bf16.mxu1 %v3665_v52 }
 0x241   :  { %3668 = vmatpush3.bf16.msra.mxu1 %v3665_v52  ;;  %v4277_v52 = vpack.c.bf16 %v54_v51, %v53_v50  ;;  %v1229_v50 = vld [vmem:[%s4695_s7 + $0xd8] sm:$0xff] }
 0x242   :  { %v3315_v54 = vpop.f32.mrb[4].mxu0 }
 0x243   :  { %v600_v55 = vadd.f32 %v3315_v54, %v2966_v53  ;;  %v594_v56 = vpop.f32.mrb[5].mxu0  ;;  %3694 = vmatprep.subr.bf16.mxu1 %v4277_v52  ;;  %v56_v54 = vld [vmem:[%s4694_s6 + $0x28] sm:$0xff] }
 0x244   :  { %v595_v58 = vadd.f32 %v2966_v53, %v594_v56  ;;  %3348 = vmatmul.mubr.msk.f32.vlgmr.msra.gmra.mrb[4].mxu1 %vm262_vm2, %v4122_v57  ;;  %v55_v53 = vld [vmem:[%s4694_s6 + $0x20] sm:$0xff]  ;;  %v57_v56 = vld [vmem:[%s4694_s6 + $0x30] sm:$0xff] }
 0x245   :  { %3350 = vmatprep.mubr.msk.f32.mxu1 %vm262_vm2, %v4127_v59  ;;  %3696 = vmatpush3.bf16.msra.mxu1 %v4277_v52 }
 0x246   :  { %v3661_v60 = vpack.c.bf16 %v600_v55, %v595_v58  ;;  %v4287_v55 = vpack.c.bf16 %v56_v54, %v55_v53  ;;  %v58_v58 = vld [vmem:[%s4694_s6 + $0x38] sm:$0xff]  ;;  %v1230_v53 = vld [vmem:[%s4695_s7 + $0xe0] sm:$0xff] }
 0x247   :  { %v3729_v54 = vpack.c.bf16 %v1230_v53, %v1229_v50  ;;  %v1363_v50 = vld [vmem:[%s4695_s7 + $0x100] sm:$0xff]  ;;  %v1452_v53 = vld [vmem:[%s4695_s7 + $0x118] sm:$0xff] }
 0x248   :  { %3662 = vmatprep.subr.bf16.mxu0 %v3661_v60  ;;  %3351 = vmatmul.mubr.msk.f32.gmra.mrb[6].mxu1 %vm262_vm2, %v4136_v61 }
 0x249   :  { %3664 = vmatpush3.bf16.msra.mxu0 %v3661_v60  ;;  %3353 = vmatprep.mubr.msk.f32.mxu1 %vm262_vm2, %v4141_v62  ;;  %v59_v60 = vld [vmem:[%s4694_s6 + $0x40] sm:$0xff] }
 0x24a   :  { %3698 = vmatprep.subr.bf16.mxu1 %v4287_v55 }
 0x24b   :  { %3700 = vmatpush3.bf16.msra.mxu1 %v4287_v55 }
 0x24c   :  { %3332 = vmatmul.mubr.msk.f32.vlgmr.msra.gmra.mrb[6].mxu0 %vm262_vm2, %v4122_v57  ;;  %3354 = vmatmul.mubr.msk.f32.gmra.mrb[8].mxu1 %vm262_vm2, %v4150_v63 }
 0x24d   :  { %3334 = vmatprep.mubr.msk.f32.mxu0 %vm262_vm2, %v4127_v59  ;;  %3356 = vmatprep.mubr.msk.f32.mxu1 %vm262_vm2, %v4157_v0 }
 0x250   :  { %3335 = vmatmul.mubr.msk.f32.gmra.mrb[8].mxu0 %vm262_vm2, %v4136_v61  ;;  %3357 = vmatmul.mubr.msk.f32.gmra.mrb[10].mxu1 %vm262_vm2, %v4168_v1 }
 0x251   :  { %3337 = vmatprep.mubr.msk.f32.mxu0 %vm262_vm2, %v4141_v62 }
 0x254   :  { %3338 = vmatmul.mubr.msk.f32.gmra.mrb[10].mxu0 %vm262_vm2, %v4150_v63 }
 0x255   :  { %3340 = vmatprep.mubr.msk.f32.mxu0 %vm262_vm2, %v4157_v0 }
 0x258   :  { %3341 = vmatmul.mubr.msk.f32.gmra.mrb[12].mxu0 %vm262_vm2, %v4168_v1 }
 0x259   :  { %3375 = vmatprep.mubr.msk.f32.mxu0 %vm437_vm6, %v511_v2  ;;  %v4300_v2 = vpack.c.bf16 %v58_v58, %v57_v56 }
 0x25b   :  { %3702 = vmatprep.subr.bf16.mxu1 %v4300_v2 }
 0x25c   :  { %3704 = vmatpush3.bf16.msra.mxu1 %v4300_v2 }
 0x31f   :  { %v3333_v5 = vpop.f32.mrb[6].mxu0 }
 0x320   :  { %v817_v6 = vmul.f32 %v3333_v5, %v4186_v3  ;;  %v777_v7 = vpop.f32.mrb[7].mxu0  ;;  %v60_v5 = vld [vmem:[%s4694_s6 + $0x48] sm:$0xff] }
 0x321   :  { %v816_v8 = vmul.f32 %v777_v7, %v4191_v4  ;;  %v3349_v7 = vpop.f32.mrb[4].mxu1 }
 0x323   :  { %v3669_v12 = vpack.c.bf16 %v817_v6, %v816_v8  ;;  %v3336_v13 = vpop.f32.mrb[8].mxu0  ;;  %v4305_v6 = vpack.c.bf16 %v60_v5, %v59_v60  ;;  %v930_v8 = vmul.f32 %v3349_v7, %v4186_v3 }
 0x324   :  { %v819_v14 = vmul.f32 %v3336_v13, %v4198_v9  ;;  %v787_v15 = vpop.f32.mrb[9].mxu0 }
 0x325   :  { %3671 = vmatprep.subr.msk.bf16.mxu0 %vm4202_vm7, %v3669_v12  ;;  %v818_v16 = vmul.f32 %v787_v15, %v4209_v11  ;;  %3706 = vmatprep.subr.bf16.mxu1 %v4305_v6 }
 0x326   :  { %3674 = vmatpush3.bf16.xpose.msk.msra.mxu0 %vm4202_vm7, %v3669_v12  ;;  %3708 = vmatpush3.bf16.msra.mxu1 %v4305_v6  ;;  %v890_v12 = vpop.f32.mrb[5].mxu1 }
 0x327   :  { %v3675_v19 = vpack.c.bf16 %v819_v14, %v818_v16  ;;  %v3339_v21 = vpop.f32.mrb[10].mxu0  ;;  %v929_v13 = vmul.f32 %v890_v12, %v4191_v4  ;;  %v3352_v14 = vpop.f32.mrb[6].mxu1 }
 0x328   :  { %v821_v22 = vmul.f32 %v3339_v21, %v4218_v17  ;;  %v797_v23 = vpop.f32.mrb[11].mxu0  ;;  %v932_v15 = vmul.f32 %v3352_v14, %v4198_v9  ;;  %v900_v16 = vpop.f32.mrb[7].mxu1 }
 0x329   :  { %3677 = vmatprep.subr.msk.bf16.mxu0 %vm4202_vm7, %v3675_v19  ;;  %v820_v24 = vmul.f32 %v797_v23, %v4225_v18  ;;  %v931_v21 = vmul.f32 %v900_v16, %v4209_v11  ;;  %v3002_v16 = vld [vmem:[%s4696_s8 + $0x5] ss:$0 sm:$0xff] }
 0x32b   :  { %v3681_v27 = vpack.c.bf16 %v821_v22, %v820_v24  ;;  %v3342_v28 = vpop.f32.mrb[12].mxu0  ;;  %v3355_v22 = vpop.f32.mrb[8].mxu1 }
 0x32c   :  { %v823_v29 = vmul.f32 %v3342_v28, %v4234_v25  ;;  %v807_v30 = vpop.f32.mrb[13].mxu0  ;;  %v934_v23 = vmul.f32 %v3355_v22, %v4218_v17  ;;  %v910_v24 = vpop.f32.mrb[9].mxu1 }
 0x32d   :  { %v822_v31 = vmul.f32 %v807_v30, %v4239_v26  ;;  %v933_v28 = vmul.f32 %v910_v24, %v4225_v18 }
 0x32e   :  { %3680 = vmatpush3.bf16.xpose.msk.msra.mxu0 %vm4202_vm7, %v3675_v19  ;;  %v3709_v19 = vpack.c.bf16 %v930_v8, %v929_v13 }
 0x32f   :  { %3683 = vmatprep.subr.msk.bf16.mxu0 %vm4202_vm7, %v3681_v27  ;;  %v3687_v32 = vpack.c.bf16 %v823_v29, %v822_v31  ;;  %v3358_v29 = vpop.f32.mrb[10].mxu1 }
 0x330   :  { %3710 = vmatprep.subr.bf16.mxu1 %v3709_v19  ;;  %v936_v30 = vmul.f32 %v3358_v29, %v4234_v25  ;;  %v920_v31 = vpop.f32.mrb[11].mxu1 }
 0x331   :  { %v935_v33 = vmul.f32 %v920_v31, %v4239_v26 }
 0x333   :  { %v3721_v34 = vpack.c.bf16 %v936_v30, %v935_v33 }
 0x336   :  { %3686 = vmatpush3.bf16.xpose.msk.msra.mxu0 %vm4202_vm7, %v3681_v27  ;;  %v3713_v27 = vpack.c.bf16 %v932_v15, %v931_v21 }
 0x337   :  { %3689 = vmatprep.subr.msk.bf16.mxu0 %vm4202_vm7, %v3687_v32 }
 0x33e   :  { %3692 = vmatpush3.bf16.xpose.msk.msra.mxu0 %vm4202_vm7, %v3687_v32  ;;  %v3717_v32 = vpack.c.bf16 %v934_v23, %v933_v28 }
 0x345   :  { %3376 = vmatmul.mubr.msk.f32.vlgmr.msra.gmra.mrb[14].mxu0 %vm437_vm6, %v4114_v47 }
 0x418   :  { %v3377_v37 = vpop.f32.mrb[14].mxu0 }
 0x419   :  { %v1043_v38 = vmul.f32 0.35355338, %v3377_v37  ;;  %v1033_v41 = vpop.f32.mrb[15].mxu0 }
 0x41a   :  { %v1042_v44 = vmul.f32 0.35355338, %v1033_v41 }
 0x41b   :  { %v1045_v46 = vadd.f32 %v1043_v38, %v4262_v43 }
 0x41c   :  { %v1044_v47 = vadd.f32 %v1042_v44, %v4265_v45 }
 0x41d   :  { %v1050_v48 = vsel %vm1046_vm10, %v1045_v46, -inf }
 0x41e   :  { %1051 = vmax.xlane.f32.xlu1 %v1050_v48  ;;  %v1047_v49 = vsel %vm1046_vm10, %v1044_v47, -inf }
 0x41f   :  { %1048 = vmax.xlane.f32.xlu0 %v1047_v49 }
 0x4ab   :  { %v1052_v35 = vpop.xlane.xlu1 %1051 }
 0x4ac   :  { %v1054_v36 = vsub.f32 %v1045_v46, %v1052_v35  ;;  %v1049_v37 = vpop.xlane.xlu0 %1048  ;;  %v1227_v46 = vld [vmem:[%s4695_s7 + $0xc8] sm:$0xff] }
 0x4ad   :  { %v1053_v38 = vsub.f32 %v1044_v47, %v1049_v37  ;;  %v1228_v47 = vld [vmem:[%s4695_s7 + $0xd0] sm:$0xff] }
 0x4ae   :  { %v1057_v41 = vmul.f32 1.442695, %v1054_v36  ;;  %v3725_v51 = vpack.c.bf16 %v1228_v47, %v1227_v46  ;;  %v1362_v47 = vld [vmem:[%s4695_s7 + $0xf8] sm:$0xff] }
 0x4af   :  { %v1055_v44 = vmul.f32 1.442695, %v1053_v38  ;;  %v1360_v38 = vld [vmem:[%s4695_s7 + $0xe8] sm:$0xff] }
 0x4b0   :  { %3726 = vmatprep.subr.bf16.mxu0 %v3725_v51 }
 0x4b1   :  { %3892 = vpow2.f32 %v1055_v44  ;;  %3728 = vmatpush3.bf16.msra.mxu0 %v3725_v51  ;;  %v1450_v44 = vld [vmem:[%s4695_s7 + $0x108] sm:$0xff]  ;;  %v3737_v51 = vpack.c.bf16 %v1363_v50, %v1362_v47 }
 0x4b2   :  { %3894 = vpow2.f32 %v1057_v41  ;;  %3730 = vmatprep.subr.bf16.mxu0 %v3729_v54  ;;  %v1361_v41 = vld [vmem:[%s4695_s7 + $0xf0] sm:$0xff] }
 0x4b5   :  { %3732 = vmatpush3.bf16.msra.mxu0 %v3729_v54  ;;  %v1453_v54 = vld [vmem:[%s4695_s7 + $0x120] sm:$0xff] }
 0x4bb   :  { %v3893_v48 = vpop.eup %3892 }
 0x4bc   :  { %v3895_v49 = vpop.eup %3894  ;;  %3394 = vmatprep.mubr.msk.f32.mxu1 %vm1046_vm10, %v3893_v48 }
 0x4bd   :  { %3395 = vmatmul.mubr.msk.f32.vlgmr.msra.gmra.mrb[12].mxu1 %vm1046_vm10, %v3895_v49 }
 0x4be   :  { %3712 = vmatpush3.bf16.msra.mxu1 %v3709_v19 }
 0x4bf   :  { %3714 = vmatprep.subr.bf16.mxu1 %v3713_v27 }
 0x4c2   :  { %3716 = vmatpush3.bf16.msra.mxu1 %v3713_v27 }
 0x4c3   :  { %3718 = vmatprep.subr.bf16.mxu1 %v3717_v32 }
 0x4c6   :  { %3720 = vmatpush3.bf16.msra.mxu1 %v3717_v32 }
 0x4c7   :  { %3722 = vmatprep.subr.bf16.mxu1 %v3721_v34 }
 0x4ca   :  { %3724 = vmatpush3.bf16.msra.mxu1 %v3721_v34 }
 0x590   :  { %v3396_v56 = vpop.f32.mrb[12].mxu1 }
 0x591   :  { %v1141_v58 = vmax.f32 %v3396_v56, 1e-20  ;;  %v1131_v60 = vpop.f32.mrb[13].mxu1  ;;  %v3745_v56 = vpack.c.bf16 %v1453_v54, %v1452_v53 }
 0x592   :  { %v1140_v5 = vmax.f32 %v1131_v60, 1e-20 }
 0x593   :  { %3896 = vrcp.f32 %v1141_v58 }
 0x594   :  { %3898 = vrcp.f32 %v1140_v5 }
 0x59d   :  { %v3897_v7 = vpop.eup %3896 }
 0x59e   :  { %v3899_v8 = vpop.eup %3898  ;;  %v1145_v13 = vmul.f32 %v3897_v7, %v3895_v49  ;;  %v1451_v49 = vld [vmem:[%s4695_s7 + $0x110] sm:$0xff] }
 0x59f   :  { %v1144_v12 = vmul.f32 %v3899_v8, %v3893_v48  ;;  %v3733_v48 = vpack.c.bf16 %v1361_v41, %v1360_v38  ;;  %v3741_v46 = vpack.c.bf16 %v1451_v49, %v1450_v44 }
 0x5a1   :  { %3413 = vmatprep.mubr.msk.f32.mxu1 %vm1046_vm10, %v1144_v12  ;;  %3734 = vmatprep.subr.bf16.mxu1 %v3733_v48 }
 0x5a2   :  { %3414 = vmatmul.mubr.msk.f32.vlgmr.msra.gmra.mrb[14].mxu1 %vm1046_vm10, %v1145_v13  ;;  %3742 = vmatprep.subr.bf16.mxu0 %v3741_v46 }
 0x5a3   :  { %3736 = vmatpush3.bf16.msra.mxu1 %v3733_v48 }
 0x5a4   :  { %3738 = vmatprep.subr.bf16.mxu1 %v3737_v51 }
 0x5a7   :  { %3740 = vmatpush3.bf16.msra.mxu1 %v3737_v51 }
 0x675   :  { %v3415_v14 = vpop.f32.mrb[14].mxu1 }
 0x676   :  { %v1218_v15 = vpop.f32.mrb[15].mxu1 }
 0x677   :  { %3424 = vmatprep.mubr.msk.f32.mxu0 %vm437_vm6, %v1218_v15 }
 0x678   :  { %3425 = vmatmul.mubr.msk.f32.vlgmr.msra.gmra.mrb[16].mxu0 %vm437_vm6, %v3415_v14  ;;  %v3005_v14 = vld [vmem:[%s4696_s8 + $0x6] ss:$0 sm:$0xff] }
 0x679   :  { %3744 = vmatpush3.bf16.msra.mxu0 %v3741_v46 }
 0x67a   :  { %3746 = vmatprep.subr.bf16.mxu0 %v3745_v56 }
 0x67d   :  { %3748 = vmatpush3.bf16.msra.mxu0 %v3745_v56  ;;  %v3015_v56 = vld [vmem:[%s4696_s8 + $0xa] ss:$0 sm:$0xff] }
 0x74b   :  { %v3426_v19 = vpop.f32.mrb[16].mxu0 }
 0x74c   :  { %v1314_v21 = vadd.f32 %v3426_v19, %v3002_v16  ;;  %v1308_v22 = vpop.f32.mrb[17].mxu0 }
 0x74d   :  { %v1309_v23 = vadd.f32 %v3002_v16, %v1308_v22  ;;  %v3006_v16 = vld [vmem:[%s4696_s8 + $0x7] ss:$0 sm:$0xff] }
 0x74e   :  { %v4341_v24 = vadd.f32 %v4083_v39, %v1314_v21 }
 0x74f   :  { %v4344_v27 = vadd.f32 %v1309_v23, %v4085_v40 }
 0x750   :  { %v1324_v29 = vsel %vm437_vm6, %v4341_v24, 0.0 }
 0x751   :  { %v1321_v28 = vsel %vm437_vm6, %v4344_v27, 0.0 }
 0x752   :  { %1322 = vadd.xlane.f32.xlu0 %v1321_v28 }
 0x756   :  { %1325 = vadd.xlane.f32.xlu0 %v1324_v29 }
 0x7df   :  { %v1323_v30 = vpop.xlane.xlu0 %1322 }
 0x7e0   :  { %v1328_v31 = vmul.f32 0.03125, %v1323_v30  ;;  %v1538_v30 = vld [vmem:[%s4695_s7 + $0x128] sm:$0xff] }
 0x7e2   :  { %v1330_v32 = vsub.f32 %v4344_v27, %v1328_v31  ;;  %v1539_v31 = vld [vmem:[%s4695_s7 + $0x130] sm:$0xff] }
 0x7e3   :  { %v1326_v33 = vpop.xlane.xlu0 %1325 }
 0x7e4   :  { %v1329_v34 = vmul.f32 0.03125, %v1326_v33  ;;  %v1332_v35 = vmul.f32 %v1330_v32, %v1330_v32  ;;  %v1540_v33 = vld [vmem:[%s4695_s7 + $0x138] sm:$0xff] }
 0x7e6   :  { %v1331_v39 = vsub.f32 %v4341_v24, %v1329_v34  ;;  %v1334_v40 = vsel %vm437_vm6, %v1332_v35, 0.0  ;;  %v1541_v34 = vld [vmem:[%s4695_s7 + $0x140] sm:$0xff] }
 0x7e7   :  { %1335 = vadd.xlane.f32.xlu1 %v1334_v40  ;;  %v3753_v35 = vpack.c.bf16 %v1541_v34, %v1540_v33  ;;  %v1763_v33 = vld [vmem:[%s4695_s7 + $0x170] sm:$0xff] }
 0x7e8   :  { %v1333_v36 = vmul.f32 %v1331_v39, %v1331_v39 }
 0x7ea   :  { %v1337_v37 = vsel %vm437_vm6, %v1333_v36, 0.0  ;;  %v3007_v36 = vld [vmem:[%s4696_s8 + $0x8] ss:$0 sm:$0xff] }
 0x7eb   :  { %1338 = vadd.xlane.f32.xlu0 %v1337_v37 }
 0x874   :  { %v1336_v58 = vpop.xlane.xlu1 %1335 }
 0x875   :  { %v1340_v60 = vmul.f32 0.03125, %v1336_v58 }
 0x877   :  { %v1342_v5 = vadd.f32 1e-05, %v1340_v60 }
 0x878   :  { %v1339_v7 = vpop.xlane.xlu0 %1338 }
 0x879   :  { %3900 = vrsqrt.f32 %v1342_v5  ;;  %v1341_v8 = vmul.f32 0.03125, %v1339_v7 }
 0x87b   :  { %v1343_v12 = vadd.f32 1e-05, %v1341_v8 }
 0x87d   :  { %3902 = vrsqrt.f32 %v1343_v12 }
 0x883   :  { %v3901_v13 = vpop.eup %3900 }
 0x884   :  { %v1346_v15 = vmul.f32 %v3901_v13, %v1330_v32  ;;  %v3749_v32 = vpack.c.bf16 %v1539_v31, %v1538_v30  ;;  %v1673_v30 = vld [vmem:[%s4695_s7 + $0x150] sm:$0xff] }
 0x886   :  { %v1352_v19 = vmul.f32 %v3005_v14, %v1346_v15  ;;  %3750 = vmatprep.subr.bf16.mxu1 %v3749_v32 }
 0x887   :  { %v3903_v21 = vpop.eup %3902 }
 0x888   :  { %v1347_v22 = vmul.f32 %v3903_v21, %v1331_v39  ;;  %v1358_v23 = vadd.f32 %v3006_v16, %v1352_v19  ;;  %v3010_v39 = vld [vmem:[%s4696_s8 + $0x9] ss:$0 sm:$0xff] }
 0x88a   :  { %v1353_v28 = vmul.f32 %v3005_v14, %v1347_v22  ;;  %3435 = vmatprep.mubr.msk.f32.mxu1 %vm437_vm6, %v1358_v23  ;;  %3446 = vmatprep.mubr.msk.f32.mxu0 %vm437_vm6, %v1358_v23 }
 0x88c   :  { %v1359_v29 = vadd.f32 %v3006_v16, %v1353_v28 }
 0x88e   :  { %3436 = vmatmul.mubr.msk.f32.vlgmr.msra.gmra.mrb[16].mxu1 %vm437_vm6, %v1359_v29  ;;  %3447 = vmatmul.mubr.msk.f32.vlgmr.msra.gmra.mrb[18].mxu0 %vm437_vm6, %v1359_v29  ;;  %v1672_v29 = vld [vmem:[%s4695_s7 + $0x148] sm:$0xff] }
 0x88f   :  { %3752 = vmatpush3.bf16.msra.mxu1 %v3749_v32  ;;  %v3757_v31 = vpack.c.bf16 %v1673_v30, %v1672_v29  ;;  %v1762_v32 = vld [vmem:[%s4695_s7 + $0x168] sm:$0xff] }
 0x890   :  { %3754 = vmatprep.subr.bf16.mxu1 %v3753_v35  ;;  %v3765_v34 = vpack.c.bf16 %v1763_v33, %v1762_v32 }
 0x891   :  { %3758 = vmatprep.subr.bf16.mxu0 %v3757_v31 }
 0x892   :  { %3760 = vmatpush3.bf16.msra.mxu0 %v3757_v31 }
 0x893   :  { %3756 = vmatpush3.bf16.msra.mxu1 %v3753_v35  ;;  %v1674_v35 = vld [vmem:[%s4695_s7 + $0x158] sm:$0xff] }
 0x894   :  { %3766 = vmatprep.subr.bf16.mxu1 %v3765_v34 }
 0x961   :  { %v3437_v40 = vpop.f32.mrb[16].mxu1  ;;  %v3448_v37 = vpop.f32.mrb[18].mxu0 }
 0x962   :  { %v1531_v38 = vadd.f32 %v3448_v37, %v3010_v39  ;;  %v1441_v41 = vpop.f32.mrb[17].mxu1  ;;  %v1525_v44 = vpop.f32.mrb[19].mxu0  ;;  %v1447_v49 = vadd.f32 %v3437_v40, %v3007_v36  ;;  %v1764_v40 = vld [vmem:[%s4695_s7 + $0x178] sm:$0xff]  ;;  %v1765_v37 = vld [vmem:[%s4695_s7 + $0x180] sm:$0xff] }
 0x963   :  { %v1526_v48 = vadd.f32 %v3010_v39, %v1525_v44  ;;  %v1442_v47 = vadd.f32 %v3007_v36, %v1441_v41  ;;  %v1675_v39 = vld [vmem:[%s4695_s7 + $0x160] sm:$0xff]  ;;  %v1846_v41 = vld [vmem:[%s4695_s7 + $0x188] sm:$0xff]  ;;  %v1847_v44 = vld [vmem:[%s4695_s7 + $0x190] sm:$0xff] }
 0x964   :  { %v1535_v46 = vmax.f32 %v1531_v38, 0.0  ;;  %v3761_v36 = vpack.c.bf16 %v1675_v39, %v1674_v35  ;;  %v3769_v38 = vpack.c.bf16 %v1765_v37, %v1764_v40 }
 0x965   :  { %v1534_v50 = vmax.f32 %v1526_v48, 0.0  ;;  %v3773_v48 = vpack.c.bf16 %v1847_v44, %v1846_v41 }
 0x966   :  { %v1537_v51 = vmul.f32 %v1535_v46, %v1447_v49  ;;  %3762 = vmatprep.subr.bf16.mxu0 %v3761_v36 }
 0x967   :  { %v1536_v53 = vmul.f32 %v1534_v50, %v1442_v47  ;;  %3764 = vmatpush3.bf16.msra.mxu0 %v3761_v36 }
 0x968   :  { %3774 = vmatprep.subr.bf16.mxu0 %v3773_v48 }
 0x969   :  { %3457 = vmatprep.mubr.msk.f32.mxu1 %vm437_vm6, %v1536_v53 }
 0x96a   :  { %3458 = vmatmul.mubr.msk.f32.vlgmr.msra.gmra.mrb[18].mxu1 %vm437_vm6, %v1537_v51 }
 0x96b   :  { %3768 = vmatpush3.bf16.msra.mxu1 %v3765_v34 }
 0x96c   :  { %3770 = vmatprep.subr.bf16.mxu1 %v3769_v38 }
 0x96f   :  { %3772 = vmatpush3.bf16.msra.mxu1 %v3769_v38 }
 0xa3d   :  { %v3459_v54 = vpop.f32.mrb[18].mxu1 }
 0xa3e   :  { %v1624_v58 = vadd.f32 %v3459_v54, %v4341_v24  ;;  %v1614_v60 = vpop.f32.mrb[19].mxu1 }
 0xa3f   :  { %v1623_v5 = vadd.f32 %v1614_v60, %v4344_v27 }
 0xa40   :  { %v4413_v7 = vadd.f32 %v3015_v56, %v1624_v58 }
 0xa41   :  { %v4415_v8 = vadd.f32 %v3015_v56, %v1623_v5  ;;  %v3016_v56 = vld [vmem:[%s4696_s8 + $0xc] ss:$0 sm:$0xff] }
 0xa42   :  { %v1637_v12 = vsel %vm437_vm6, %v4413_v7, 0.0 }
 0xa43   :  { %1638 = vadd.xlane.f32.xlu0 %v1637_v12  ;;  %v1634_v13 = vsel %vm437_vm6, %v4415_v8, 0.0  ;;  %v3017_v12 = vld [vmem:[%s4696_s8 + $0xd] ss:$0 sm:$0xff] }
 0xa44   :  { %1635 = vadd.xlane.f32.xlu1 %v1634_v13 }
 0xad0   :  { %v1639_v14 = vpop.xlane.xlu0 %1638 }
 0xad1   :  { %v1641_v15 = vmul.f32 0.03125, %v1639_v14  ;;  %v1636_v16 = vpop.xlane.xlu1 %1635 }
 0xad2   :  { %v1640_v19 = vmul.f32 0.03125, %v1636_v16  ;;  %v1849_v16 = vld [vmem:[%s4695_s7 + $0x1a0] sm:$0xff] }
 0xad3   :  { %v1643_v24 = vsub.f32 %v4413_v7, %v1641_v15  ;;  %v1848_v15 = vld [vmem:[%s4695_s7 + $0x198] sm:$0xff] }
 0xad4   :  { %v1642_v27 = vsub.f32 %v4415_v8, %v1640_v19 }
 0xad5   :  { %v1645_v21 = vmul.f32 %v1643_v24, %v1643_v24 }
 0xad6   :  { %v1644_v22 = vmul.f32 %v1642_v27, %v1642_v27 }
 0xad7   :  { %v1649_v23 = vsel %vm437_vm6, %v1645_v21, 0.0 }
 0xad8   :  { %1650 = vadd.xlane.f32.xlu0 %v1649_v23  ;;  %v1646_v28 = vsel %vm437_vm6, %v1644_v22, 0.0  ;;  %v3777_v22 = vpack.c.bf16 %v1849_v16, %v1848_v15 }
 0xad9   :  { %1647 = vadd.xlane.f32.xlu1 %v1646_v28 }
 0xb65   :  { %v1651_v49 = vpop.xlane.xlu0 %1650 }
 0xb66   :  { %v1653_v46 = vmul.f32 0.03125, %v1651_v49  ;;  %v1648_v47 = vpop.xlane.xlu1 %1647 }
 0xb67   :  { %v1652_v50 = vmul.f32 0.03125, %v1648_v47 }
 0xb68   :  { %v1655_v51 = vadd.f32 1e-05, %v1653_v46 }
 0xb69   :  { %v1654_v53 = vadd.f32 1e-05, %v1652_v50 }
 0xb6a   :  { %3904 = vrsqrt.f32 %v1655_v51 }
 0xb6b   :  { %3906 = vrsqrt.f32 %v1654_v53 }
 0xb74   :  { %v3905_v54 = vpop.eup %3904 }
 0xb75   :  { %v3907_v58 = vpop.eup %3906  ;;  %v1659_v60 = vmul.f32 %v3905_v54, %v1643_v24  ;;  %v3018_v24 = vld [vmem:[%s4696_s8 + $0xe] ss:$0 sm:$0xff] }
 0xb76   :  { %v1658_v5 = vmul.f32 %v3907_v58, %v1642_v27  ;;  %v3021_v27 = vld [vmem:[%s4696_s8 + $0xf] ss:$0 sm:$0xff] }
 0xb77   :  { %v1665_v13 = vmul.f32 %v3016_v56, %v1659_v60 }
 0xb78   :  { %v1664_v14 = vmul.f32 %v3016_v56, %v1658_v5 }
 0xb79   :  { %v1671_v21 = vadd.f32 %v3017_v12, %v1665_v13 }
 0xb7a   :  { %v1670_v19 = vadd.f32 %v3017_v12, %v1664_v14 }
 0xb7c   :  { %3468 = vmatprep.mubr.msk.f32.mxu0 %vm437_vm6, %v1670_v19  ;;  %3479 = vmatprep.mubr.msk.f32.mxu1 %vm437_vm6, %v1670_v19 }
 0xb7d   :  { %3469 = vmatmul.mubr.msk.f32.vlgmr.msra.gmra.mrb[20].mxu0 %vm437_vm6, %v1671_v21  ;;  %3480 = vmatmul.mubr.msk.f32.vlgmr.msra.gmra.mrb[20].mxu1 %vm437_vm6, %v1671_v21 }
 0xb7e   :  { %3776 = vmatpush3.bf16.msra.mxu0 %v3773_v48  ;;  %3490 = vmatprep.mubr.msk.f32.mxu0 %vm437_vm6, %v1670_v19 }
 0xb7f   :  { %3778 = vmatprep.subr.bf16.mxu0 %v3777_v22  ;;  %3497 = vmatprep.mubr.msk.f32.mxu1 %vm262_vm2, %v4102_v42 }
 0xb82   :  { %3780 = vmatpush3.bf16.msra.mxu0 %v3777_v22 }
 0xb85   :  { %3491 = vmatmul.mubr.msk.f32.vlgmr.msra.gmra.mrb[22].mxu0 %vm437_vm6, %v1671_v21 }
 0xb86   :  { %3513 = vmatprep.mubr.msk.f32.mxu0 %vm262_vm2, %v4102_v42  ;;  %v3024_v42 = vld [vmem:[%s4696_s8 + $0x10] ss:$0 sm:$0xff] }
 0xc50   :  { %v3470_v23 = vpop.f32.mrb[20].mxu0  ;;  %v3481_v28 = vpop.f32.mrb[20].mxu1 }
 0xc51   :  { %v4483_v29 = vadd.f32 %v3470_v23, %v3018_v24  ;;  %v1843_v30 = vadd.f32 %v3481_v28, %v3021_v27  ;;  %v1753_v31 = vpop.f32.mrb[21].mxu0  ;;  %v1837_v32 = vpop.f32.mrb[21].mxu1 }
 0xc52   :  { %v1838_v33 = vadd.f32 %v3021_v27, %v1837_v32  ;;  %v1754_v38 = vadd.f32 %v3018_v24, %v1753_v31 }
 0xc54   :  { %v3781_v34 = vpack.c.bf16 %v1843_v30, %v1838_v33 }
 0xc56   :  { %3782 = vmatprep.subr.bf16.mxu1 %v3781_v34 }
 0xc57   :  { %3784 = vmatpush3.bf16.msra.mxu1 %v3781_v34 }
 0xc58   :  { %v3492_v35 = vpop.f32.mrb[22].mxu0 }
 0xc59   :  { %v1927_v39 = vadd.f32 %v3492_v35, %v3024_v42  ;;  %v1921_v40 = vpop.f32.mrb[23].mxu0 }
 0xc5a   :  { %v1922_v36 = vadd.f32 %v3024_v42, %v1921_v40  ;;  %3498 = vmatmul.mubr.msk.f32.vlgmr.msra.gmra.mrb[22].mxu1 %vm262_vm2, %v4122_v57 }
 0xc5b   :  { %3500 = vmatprep.mubr.msk.f32.mxu1 %vm262_vm2, %v4127_v59 }
 0xc5c   :  { %v3785_v37 = vpack.c.bf16 %v1927_v39, %v1922_v36 }
 0xc5e   :  { %3786 = vmatprep.subr.bf16.mxu0 %v3785_v37  ;;  %3501 = vmatmul.mubr.msk.f32.gmra.mrb[24].mxu1 %vm262_vm2, %v4136_v61 }
 0xc5f   :  { %3788 = vmatpush3.bf16.msra.mxu0 %v3785_v37  ;;  %3503 = vmatprep.mubr.msk.f32.mxu1 %vm262_vm2, %v4141_v62 }
 0xc60   :  { %3814 = vmatprep.subr.bf16.mxu0 %v4277_v52 }
 0xc62   :  { %3504 = vmatmul.mubr.msk.f32.gmra.mrb[26].mxu1 %vm262_vm2, %v4150_v63  ;;  %3514 = vmatmul.mubr.msk.f32.vlgmr.msra.gmra.mrb[24].mxu0 %vm262_vm2, %v4122_v57 }
 0xc63   :  { %3506 = vmatprep.mubr.msk.f32.mxu1 %vm262_vm2, %v4157_v0  ;;  %3516 = vmatprep.mubr.msk.f32.mxu0 %vm262_vm2, %v4127_v59 }
 0xc64   :  { %3816 = vmatpush3.bf16.msra.mxu0 %v4277_v52 }
 0xc65   :  { %3818 = vmatprep.subr.bf16.mxu0 %v4287_v55 }
 0xc66   :  { %3507 = vmatmul.mubr.msk.f32.gmra.mrb[28].mxu1 %vm262_vm2, %v4168_v1  ;;  %3517 = vmatmul.mubr.msk.f32.gmra.mrb[26].mxu0 %vm262_vm2, %v4136_v61 }
 0xc67   :  { %3541 = vmatprep.mubr.msk.f32.mxu1 %vm437_vm6, %v1754_v38  ;;  %3519 = vmatprep.mubr.msk.f32.mxu0 %vm262_vm2, %v4141_v62  ;;  %v2448_v38 = vld [vmem:[%s4695_s7 + $0x1c0] sm:$0xff] }
 0xc68   :  { %3820 = vmatpush3.bf16.msra.mxu0 %v4287_v55 }
 0xc69   :  { %3822 = vmatprep.subr.bf16.mxu0 %v4300_v2 }
 0xc6a   :  { %3520 = vmatmul.mubr.msk.f32.gmra.mrb[28].mxu0 %vm262_vm2, %v4150_v63 }
 0xc6b   :  { %3522 = vmatprep.mubr.msk.f32.mxu0 %vm262_vm2, %v4157_v0 }
 0xc6c   :  { %3824 = vmatpush3.bf16.msra.mxu0 %v4300_v2 }
 0xc6d   :  { %3826 = vmatprep.subr.bf16.mxu0 %v4305_v6 }
 0xc6e   :  { %3523 = vmatmul.mubr.msk.f32.gmra.mrb[30].mxu0 %vm262_vm2, %v4168_v1 }
 0xc70   :  { %3828 = vmatpush3.bf16.msra.mxu0 %v4305_v6 }
 0xd2d   :  { %v3499_v57 = vpop.f32.mrb[22].mxu1 }
 0xd2e   :  { %v2036_v59 = vmul.f32 %v3499_v57, %v4186_v3  ;;  %v1996_v61 = vpop.f32.mrb[23].mxu1 }
 0xd2f   :  { %v2035_v62 = vmul.f32 %v1996_v61, %v4191_v4 }
 0xd31   :  { %v3789_v52 = vpack.c.bf16 %v2036_v59, %v2035_v62  ;;  %v3502_v63 = vpop.f32.mrb[24].mxu1 }
 0xd32   :  { %v2038_v55 = vmul.f32 %v3502_v63, %v4198_v9  ;;  %v2006_v0 = vpop.f32.mrb[25].mxu1 }
 0xd33   :  { %3791 = vmatprep.subr.msk.bf16.mxu1 %vm4202_vm7, %v3789_v52  ;;  %v2037_v2 = vmul.f32 %v2006_v0, %v4209_v11 }
 0xd34   :  { %3794 = vmatpush3.bf16.xpose.msk.msra.mxu1 %vm4202_vm7, %v3789_v52 }
 0xd35   :  { %v3795_v1 = vpack.c.bf16 %v2038_v55, %v2037_v2  ;;  %v3505_v6 = vpop.f32.mrb[26].mxu1  ;;  %v3515_v15 = vpop.f32.mrb[24].mxu0 }
 0xd36   :  { %v2040_v41 = vmul.f32 %v3505_v6, %v4218_v17  ;;  %v2016_v44 = vpop.f32.mrb[27].mxu1  ;;  %v2149_v10 = vmul.f32 %v3515_v15, %v4186_v3  ;;  %v2109_v16 = vpop.f32.mrb[25].mxu0  ;;  %v2577_v15 = vld [vmem:[%s4695_s7 + $0x1c8] sm:$0xff] }
 0xd37   :  { %3797 = vmatprep.subr.msk.bf16.mxu1 %vm4202_vm7, %v3795_v1  ;;  %v2039_v48 = vmul.f32 %v2016_v44, %v4225_v18  ;;  %v2148_v19 = vmul.f32 %v2109_v16, %v4191_v4  ;;  %v2667_v16 = vld [vmem:[%s4695_s7 + $0x1e8] sm:$0xff] }
 0xd39   :  { %v3801_v49 = vpack.c.bf16 %v2040_v41, %v2039_v48  ;;  %v3508_v46 = vpop.f32.mrb[28].mxu1  ;;  %v3518_v21 = vpop.f32.mrb[26].mxu0  ;;  %v3829_v27 = vpack.c.bf16 %v2149_v10, %v2148_v19  ;;  %v3057_v41 = vld [vmem:[%s4696_s8 + $0x11] ss:$0 sm:$0xff] }
 0xd3a   :  { %v2042_v47 = vmul.f32 %v3508_v46, %v4234_v25  ;;  %v2026_v50 = vpop.f32.mrb[29].mxu1  ;;  %v2151_v22 = vmul.f32 %v3518_v21, %v4198_v9  ;;  %v2119_v24 = vpop.f32.mrb[27].mxu0  ;;  %v2578_v10 = vld [vmem:[%s4695_s7 + $0x1d0] sm:$0xff] }
 0xd3b   :  { %v2041_v51 = vmul.f32 %v2026_v50, %v4239_v26  ;;  %3830 = vmatprep.subr.bf16.mxu0 %v3829_v27  ;;  %v3853_v19 = vpack.c.bf16 %v2578_v10, %v2577_v15  ;;  %v2668_v21 = vld [vmem:[%s4695_s7 + $0x1f0] sm:$0xff]  ;;  %v3920_v15 = vld [vmem:[%s4692_s4 + $0x8] sm:$0xff] }
 0xd3c   :  { %3800 = vmatpush3.bf16.xpose.msk.msra.mxu1 %vm4202_vm7, %v3795_v1 }
 0xd3d   :  { %3803 = vmatprep.subr.msk.bf16.mxu1 %vm4202_vm7, %v3801_v49  ;;  %v3807_v53 = vpack.c.bf16 %v2042_v47, %v2041_v51 }
 0xd44   :  { %3806 = vmatpush3.bf16.xpose.msk.msra.mxu1 %vm4202_vm7, %v3801_v49 }
 0xd45   :  { %3809 = vmatprep.subr.msk.bf16.mxu1 %vm4202_vm7, %v3807_v53 }
 0xd4c   :  { %3812 = vmatpush3.bf16.xpose.msk.msra.mxu1 %vm4202_vm7, %v3807_v53 }
 0xd53   :  { %3542 = vmatmul.mubr.msk.f32.vlgmr.msra.gmra.mrb[30].mxu1 %vm437_vm6, %v4483_v29 }
 0xe26   :  { %v3543_v54 = vpop.f32.mrb[30].mxu1 }
 0xe27   :  { %v2262_v56 = vmul.f32 0.35355338, %v3543_v54  ;;  %v2252_v58 = vpop.f32.mrb[31].mxu1 }
 0xe28   :  { %v2261_v60 = vmul.f32 0.35355338, %v2252_v58 }
 0xe29   :  { %v2264_v5 = vadd.f32 %v2262_v56, %v4262_v43  ;;  %v2150_v43 = vmul.f32 %v2119_v24, %v4209_v11  ;;  %v2579_v24 = vld [vmem:[%s4695_s7 + $0x1d8] sm:$0xff] }
 0xe2a   :  { %v2263_v12 = vadd.f32 %v2261_v60, %v4265_v45  ;;  %v3521_v45 = vpop.f32.mrb[28].mxu0 }
 0xe2b   :  { %v2268_v13 = vsel %vm1046_vm10, %v2264_v5, -inf  ;;  %v2153_v23 = vmul.f32 %v3521_v45, %v4218_v17  ;;  %v2129_v28 = vpop.f32.mrb[29].mxu0  ;;  %v3833_v29 = vpack.c.bf16 %v2151_v22, %v2150_v43  ;;  %v3861_v22 = vpack.c.bf16 %v2668_v21, %v2667_v16  ;;  %v2669_v43 = vld [vmem:[%s4695_s7 + $0x1f8] sm:$0xff] }
 0xe2c   :  { %2269 = vmax.xlane.f32.xlu0 %v2268_v13  ;;  %v2265_v14 = vsel %vm1046_vm10, %v2263_v12, -inf  ;;  %v2152_v30 = vmul.f32 %v2129_v28, %v4225_v18  ;;  %v3524_v31 = vpop.f32.mrb[30].mxu0  ;;  %v2445_v18 = vld [vmem:[%s4695_s7 + $0x1a8] sm:$0xff] }
 0xe2d   :  { %2266 = vmax.xlane.f32.xlu1 %v2265_v14  ;;  %v2155_v3 = vmul.f32 %v3524_v31, %v4234_v25  ;;  %v2139_v32 = vpop.f32.mrb[31].mxu0  ;;  %v2446_v25 = vld [vmem:[%s4695_s7 + $0x1b0] sm:$0xff] }
 0xe2e   :  { %v3837_v4 = vpack.c.bf16 %v2153_v23, %v2152_v30  ;;  %v2154_v33 = vmul.f32 %v2139_v32, %v4239_v26  ;;  %v2447_v26 = vld [vmem:[%s4695_s7 + $0x1b8] sm:$0xff]  ;;  %v3845_v37 = vpack.c.bf16 %v2446_v25, %v2445_v18  ;;  %v2670_v23 = vld [vmem:[%s4695_s7 + $0x200] sm:$0xff]  ;;  %v2755_v18 = vld [vmem:[%s4695_s7 + $0x208] sm:$0xff] }
 0xe2f   :  { %v3849_v57 = vpack.c.bf16 %v2448_v38, %v2447_v26  ;;  %v3865_v28 = vpack.c.bf16 %v2670_v23, %v2669_v43  ;;  %v2756_v25 = vld [vmem:[%s4695_s7 + $0x210] sm:$0xff]  ;;  %v2758_v38 = vld [vmem:[%s4695_s7 + $0x220] sm:$0xff] }
 0xe30   :  { %v3841_v9 = vpack.c.bf16 %v2155_v3, %v2154_v33  ;;  %3846 = vmatprep.subr.bf16.mxu1 %v3845_v37  ;;  %v3869_v26 = vpack.c.bf16 %v2756_v25, %v2755_v18 }
 0xe31   :  { %3848 = vmatpush3.bf16.msra.mxu1 %v3845_v37  ;;  %v2757_v37 = vld [vmem:[%s4695_s7 + $0x218] sm:$0xff] }
 0xe32   :  { %3850 = vmatprep.subr.bf16.mxu1 %v3849_v57 }
 0xe35   :  { %3852 = vmatpush3.bf16.msra.mxu1 %v3849_v57  ;;  %v3873_v57 = vpack.c.bf16 %v2758_v38, %v2757_v37 }
 0xe36   :  { %3862 = vmatprep.subr.bf16.mxu1 %v3861_v22 }
 0xeb9   :  { %v2270_v34 = vpop.xlane.xlu0 %2269 }
 0xeba   :  { %v2272_v42 = vsub.f32 %v2264_v5, %v2270_v34  ;;  %v2267_v35 = vpop.xlane.xlu1 %2266 }
 0xebb   :  { %v2271_v11 = vsub.f32 %v2263_v12, %v2267_v35 }
 0xebc   :  { %v2275_v39 = vmul.f32 1.442695, %v2272_v42 }
 0xebd   :  { %v2273_v40 = vmul.f32 1.442695, %v2271_v11  ;;  %v3061_v11 = vld [vmem:[%s4696_s8 + $0x13] ss:$0 sm:$0xff] }
 0xebf   :  { %3908 = vpow2.f32 %v2273_v40 }
 0xec0   :  { %3910 = vpow2.f32 %v2275_v39 }
 0xec9   :  { %v3909_v17 = vpop.eup %3908 }
 0xeca   :  { %v3911_v36 = vpop.eup %3910  ;;  %3560 = vmatprep.mubr.msk.f32.mxu0 %vm1046_vm10, %v3909_v17 }
 0xecb   :  { %3561 = vmatmul.mubr.msk.f32.vlgmr.msra.gmra.mrb[32].mxu0 %vm1046_vm10, %v3911_v36 }
 0xecc   :  { %3832 = vmatpush3.bf16.msra.mxu0 %v3829_v27  ;;  %v2580_v27 = vld [vmem:[%s4695_s7 + $0x1e0] sm:$0xff] }
 0xecd   :  { %3834 = vmatprep.subr.bf16.mxu0 %v3833_v29  ;;  %v3857_v45 = vpack.c.bf16 %v2580_v27, %v2579_v24  ;;  %v3950_v24 = vmov 1.0  }
 0xed0   :  { %3836 = vmatpush3.bf16.msra.mxu0 %v3833_v29 }
 0xed1   :  { %3838 = vmatprep.subr.bf16.mxu0 %v3837_v4 }
 0xed4   :  { %3840 = vmatpush3.bf16.msra.mxu0 %v3837_v4 }
 0xed5   :  { %3842 = vmatprep.subr.bf16.mxu0 %v3841_v9 }
 0xed8   :  { %3844 = vmatpush3.bf16.msra.mxu0 %v3841_v9  ;;  %v3060_v9 = vld [vmem:[%s4696_s8 + $0x12] ss:$0 sm:$0xff] }
 0xed9   :  { %3854 = vmatprep.subr.bf16.mxu0 %v3853_v19 }
 0xf9e   :  { %v3562_v59 = vpop.f32.mrb[32].mxu0 }
 0xf9f   :  { %v2359_v61 = vmax.f32 %v3562_v59, 1e-20  ;;  %v2349_v62 = vpop.f32.mrb[33].mxu0  ;;  %v3065_v59 = vld [vmem:[%s4696_s8 + $0x15] ss:$0 sm:$0xff] }
 0xfa0   :  { %v2358_v52 = vmax.f32 %v2349_v62, 1e-20  ;;  %v3062_v62 = vld [vmem:[%s4696_s8 + $0x14] ss:$0 sm:$0xff] }
 0xfa1   :  { %3912 = vrcp.f32 %v2359_v61 }
 0xfa2   :  { %3914 = vrcp.f32 %v2358_v52 }
 0xfab   :  { %v3913_v63 = vpop.eup %3912 }
 0xfac   :  { %v3915_v55 = vpop.eup %3914  ;;  %v2363_v2 = vmul.f32 %v3913_v63, %v3911_v36 }
 0xfad   :  { %v2362_v0 = vmul.f32 %v3915_v55, %v3909_v17 }
 0xfaf   :  { %3579 = vmatprep.mubr.msk.f32.mxu0 %vm1046_vm10, %v2362_v0 }
 0xfb0   :  { %3580 = vmatmul.mubr.msk.f32.vlgmr.msra.gmra.mrb[34].mxu0 %vm1046_vm10, %v2363_v2 }
 0xfb1   :  { %3856 = vmatpush3.bf16.msra.mxu0 %v3853_v19  ;;  %v3921_v19 = vld [vmem:[%s4692_s4] sm:$0xff]  ;;  %s3926_s4 = scalar_lea.vmem %s2944_s10, 32 }
 0xfb2   :  { %3858 = vmatprep.subr.bf16.mxu0 %v3857_v45  ;;  %p3928_p2 = scmp.lt.s32.totalorder %s3926_s4, %s3922_s11 }
 0xfb4   :  { %p3929_p3 = por %p3928_p2, %p3927_p1 }
 0xfb5   :  { %3860 = vmatpush3.bf16.msra.mxu0 %v3857_v45 }
 0xfb6   :  { %3870 = vmatprep.subr.bf16.mxu0 %v3869_v26  ;;  %p3930_p4 = pnand %p3929_p3, %p3923_p0 }
0x1083   :  { %v3581_v1 = vpop.f32.mrb[34].mxu0 }
0x1084   :  { %v2436_v6 = vpop.f32.mrb[35].mxu0 }
0x1085   :  { %3590 = vmatprep.mubr.msk.f32.mxu1 %vm437_vm6, %v2436_v6 }
0x1086   :  { %3591 = vmatmul.mubr.msk.f32.vlgmr.msra.gmra.mrb[32].mxu1 %vm437_vm6, %v3581_v1 }
0x1087   :  { %3864 = vmatpush3.bf16.msra.mxu1 %v3861_v22 }
0x1088   :  { %3866 = vmatprep.subr.bf16.mxu1 %v3865_v28 }
0x108b   :  { %3868 = vmatpush3.bf16.msra.mxu1 %v3865_v28 }
0x1159   :  { %v3592_v44 = vpop.f32.mrb[32].mxu1 }
0x115a   :  { %v2532_v48 = vadd.f32 %v3592_v44, %v3057_v41  ;;  %v2526_v49 = vpop.f32.mrb[33].mxu1 }
0x115b   :  { %v2527_v46 = vadd.f32 %v3057_v41, %v2526_v49 }
0x115c   :  { %v4585_v47 = vadd.f32 %v2532_v48, %v4413_v7 }
0x115d   :  { %v4588_v50 = vadd.f32 %v2527_v46, %v4415_v8 }
0x115e   :  { %v2542_v51 = vsel %vm437_vm6, %v4585_v47, 0.0 }
0x115f   :  { %2543 = vadd.xlane.f32.xlu0 %v2542_v51  ;;  %v2539_v53 = vsel %vm437_vm6, %v4588_v50, 0.0  ;;  %v3070_v51 = vld [vmem:[%s4696_s8 + $0x16] ss:$0 sm:$0xff] }
0x1160   :  { %2540 = vadd.xlane.f32.xlu1 %v2539_v53 }
0x11ec   :  { %v2544_v54 = vpop.xlane.xlu0 %2543 }
0x11ed   :  { %v2546_v56 = vmul.f32 0.03125, %v2544_v54  ;;  %v2541_v58 = vpop.xlane.xlu1 %2540 }
0x11ee   :  { %v2545_v60 = vmul.f32 0.03125, %v2541_v58  ;;  %v2850_v58 = vld [vmem:[%s4695_s7 + $0x60] sm:$0xff] }
0x11ef   :  { %v2548_v5 = vsub.f32 %v4585_v47, %v2546_v56 }
0x11f0   :  { %v2547_v7 = vsub.f32 %v4588_v50, %v2545_v60 }
0x11f1   :  { %v2550_v12 = vmul.f32 %v2548_v5, %v2548_v5 }
0x11f2   :  { %v2549_v13 = vmul.f32 %v2547_v7, %v2547_v7 }
0x11f3   :  { %v2554_v8 = vsel %vm437_vm6, %v2550_v12, 0.0 }
0x11f4   :  { %2555 = vadd.xlane.f32.xlu0 %v2554_v8  ;;  %v2551_v14 = vsel %vm437_vm6, %v2549_v13, 0.0 }
0x11f5   :  { %2552 = vadd.xlane.f32.xlu1 %v2551_v14  ;;  %v3948_v14 = vmov 0.0|0.0  }
0x11f6   :  { %3877 = vmatprep.subr.bf16.mxu1 %v3948_v14 }
0x1281   :  { %v2556_v29 = vpop.xlane.xlu0 %2555 }
0x1282   :  { %v2558_v30 = vmul.f32 0.03125, %v2556_v29  ;;  %v2553_v31 = vpop.xlane.xlu1 %2552 }
0x1283   :  { %v2557_v3 = vmul.f32 0.03125, %v2553_v31 }
0x1284   :  { %v2560_v32 = vadd.f32 1e-05, %v2558_v30 }
0x1285   :  { %v2559_v4 = vadd.f32 1e-05, %v2557_v3 }
0x1286   :  { %3916 = vrsqrt.f32 %v2560_v32 }
0x1287   :  { %3918 = vrsqrt.f32 %v2559_v4 }
0x1290   :  { %v3917_v33 = vpop.eup %3916 }
0x1291   :  { %v3919_v34 = vpop.eup %3918  ;;  %v2564_v42 = vmul.f32 %v3917_v33, %v2548_v5  ;;  %v2849_v5 = vld [vmem:[%s4695_s7 + $0x58] sm:$0xff] }
0x1292   :  { %v2563_v35 = vmul.f32 %v3919_v34, %v2547_v7 }
0x1293   :  { %v2570_v39 = vmul.f32 %v3060_v9, %v2564_v42 }
0x1294   :  { %v2569_v40 = vmul.f32 %v3060_v9, %v2563_v35 }
0x1295   :  { %v2576_v36 = vadd.f32 %v3061_v11, %v2570_v39 }
0x1296   :  { %v2575_v17 = vadd.f32 %v3061_v11, %v2569_v40 }
0x1298   :  { %3601 = vmatprep.mubr.msk.f32.mxu0 %vm437_vm6, %v2575_v17  ;;  %3612 = vmatprep.mubr.msk.f32.mxu1 %vm437_vm6, %v2575_v17 }
0x1299   :  { %3602 = vmatmul.mubr.msk.f32.vlgmr.msra.gmra.mrb[36].mxu0 %vm437_vm6, %v2576_v36  ;;  %3613 = vmatmul.mubr.msk.f32.vlgmr.msra.gmra.mrb[34].mxu1 %vm437_vm6, %v2576_v36 }
0x129a   :  { %3872 = vmatpush3.bf16.msra.mxu0 %v3869_v26  ;;  %3630 = vmatprep.mubr.msk.f32.mxu1 %vm3949_vm11, %v3947_v20  ;;  %v2861_v20 = vld [vmem:[%s4696_s8 + $0x18] sm:$0x1] }
0x129b   :  { %3874 = vmatprep.subr.bf16.mxu0 %v3873_v57 }
0x129e   :  { %3876 = vmatpush3.bf16.msra.mxu0 %v3873_v57 }
0x136c   :  { %v3603_v61 = vpop.f32.mrb[36].mxu0  ;;  %v3614_v52 = vpop.f32.mrb[34].mxu1 }
0x136d   :  { %v2748_v63 = vadd.f32 %v3614_v52, %v3065_v59  ;;  %v2658_v55 = vpop.f32.mrb[37].mxu0  ;;  %v2742_v0 = vpop.f32.mrb[35].mxu1  ;;  %v2664_v1 = vadd.f32 %v3603_v61, %v3062_v62 }
0x136e   :  { %v2743_v2 = vadd.f32 %v3065_v59, %v2742_v0  ;;  %v2659_v41 = vadd.f32 %v3062_v62, %v2658_v55 }
0x136f   :  { %v2752_v6 = vmax.f32 %v2748_v63, 0.0 }
0x1370   :  { %v2751_v44 = vmax.f32 %v2743_v2, 0.0 }
0x1371   :  { %v2754_v48 = vmul.f32 %v2752_v6, %v2664_v1 }
0x1372   :  { %v2753_v49 = vmul.f32 %v2751_v44, %v2659_v41 }
0x1374   :  { %3623 = vmatprep.mubr.msk.f32.mxu0 %vm437_vm6, %v2753_v49 }
0x1375   :  { %3624 = vmatmul.mubr.msk.f32.vlgmr.msra.gmra.mrb[38].mxu0 %vm437_vm6, %v2754_v48 }
0x1448   :  { %v3625_v46 = vpop.f32.mrb[38].mxu0 }
0x1449   :  { %v2841_v53 = vadd.f32 %v3625_v46, %v4585_v47  ;;  %v2831_v54 = vpop.f32.mrb[39].mxu0 }
0x144a   :  { %v2840_v56 = vadd.f32 %v2831_v54, %v4588_v50 }
0x144b   :  { %v2848_v60 = vadd.f32 %v3070_v51, %v2841_v53 }
0x144c   :  { %v2847_v7 = vadd.f32 %v3070_v51, %v2840_v56 }
0x144d   :  { %v2852_v12 = vmul.f32 %v2850_v58, %v2848_v60 }
0x144e   :  { %v2851_v13 = vmul.f32 %v2849_v5, %v2847_v7 }
0x144f   :  { %v2856_v8 = vsel %vm437_vm6, %v2852_v12, 0.0 }
0x1450   :  { %2857 = vadd.xlane.f32.xlu0 %v2856_v8  ;;  %v2853_v47 = vsel %vm437_vm6, %v2851_v13, 0.0 }
0x1451   :  { %2854 = vadd.xlane.f32.xlu1 %v2853_v47 }
0x14dd   :  { %v2858_v50 = vpop.xlane.xlu0 %2857 }
0x14de   :  { %v2860_v10 = vmul.f32 %v3920_v15, %v2858_v50  ;;  %v2855_v16 = vpop.xlane.xlu1 %2854 }
0x14df   :  { %v2859_v21 = vmul.f32 %v3921_v19, %v2855_v16 }
0x14e1   :  { %v3878_v22 = vpack.c.bf16 %v2860_v10, %v2859_v21 }
0x14e3   :  { %3879 = vmatpush3.bf16.msra.mxu1 %v3878_v22 }
0x14e6   :  { %3631 = vmatmul.mubr.msk.f32.vlgmr.msra.gmra.mrb[36].mxu1 %vm262_vm2, %v3950_v24 }
0x15b9   :  { %v2931_v27 = vpop.f32.mrb[36].mxu1 }
0x15ba   :  { %v2932_v43 = vadd.f32 %v2931_v27, %v2861_v20  ;;  %v3632_v45 = vpop.f32.mrb[37].mxu1 }
0x15bc   :  { %2936 = vst.msk [vmem:[#allocation2] sm:$0x1] %vm2935_vm12, %v2932_v43 }
0x15bd   :  { %3933 = shalt.err (!%p3930_p4)
}
0x15be   :  { %s3934_s8 = scalar_lea.hbm %s4697_s9, 16 }
0x15bf   :  { %p3935_p5 = scmp.ne.s32.totalorder %s4697_s9, %s3934_s8  ;;  %p3938_p6 = scmp.lt.u32.totalorder %s3934_s8, %s4697_s9 }
0x15c1   :  { %p3940_p7 = pnand %p3938_p6, %p3935_p5 }
0x15c3   :  { %3943 = shalt.err (!%p3940_p7)
}
0x15c4   :  { %2946 = dma.vmem_to_hbm [thread:$0]  %s2944_s10, 16, %s4697_s9, [#allocation3]  }
0x15c5   :  { %3944 = dma.done.wait [#allocation3], 16  }
0x15c6   :  { %3945 = vsyncadd [#allocation3], 4294967280 }
0x15c7   :  { %2950 = vsyncpa [#allocation3], 1 }

</bundles_post_ra>
